<compile_context>
chip_gen: v6e
topology: v6e:2x2x1
jax: 0.10.0
libtpu: 0.0.40
codegen_flags: <defaults>
</compile_context>

<pallas_src>
import functools

import numpy as np

import jax
import jax.numpy as jnp
from jax.experimental import pallas as pl
from jax.experimental.pallas import tpu as pltpu


# ----------------------------------------------------------------------------
# The fused Bottleneck kernel.  One grid step processes a lane tile holding
# whole images; everything inside is lane-dense along the packed spatial axis.
# ----------------------------------------------------------------------------
def _bottleneck_kernel(x_ref, w1_ref, b1_ref, wqkv_ref, bqkv_ref, pos_mat_ref,
                       head_sel_ref, expand_ref, mask_ref, sa_ref, ba_ref,
                       w3_ref, b3_ref, o_ref, prods_ref, logits_ref, *, W):
    width = w1_ref.shape[0]
    hn_pad = expand_ref.shape[1]
    L = x_ref.shape[1]               # lane tile = whole images packed along lanes
    mm = w1_ref.dtype                # matmul operand dtype (bf16 or f32)

    # ---- conv1 (1x1) + folded bn1 + relu  (MXU, f32 accumulate) -------------
    y = jnp.dot(w1_ref[...], x_ref[...].astype(mm),
                preferred_element_type=jnp.float32) + b1_ref[...]
    y = jnp.maximum(y, 0.0)                                          # (width, L)

    # ---- fused q/k/v 1x1 convs + folded bns (relu on q, k; not on v) --------
    qkv = jnp.dot(wqkv_ref[...], y.astype(mm),
                  preferred_element_type=jnp.float32) + bqkv_ref[...]
    qk = jnp.maximum(qkv[:2 * width], 0.0)
    q = qk[:width]                                                   # (width, L)
    k = qk[width:]
    v = qkv[2 * width:]

    # lane shift that brings pixel (h+dh, w+dw) to position (h, w); wrap-around
    # (image edges / neighbouring packed images) is killed by the boundary mask.
    def shift_amt(kk):
        d = (kk // 3 - 1) * W + (kk % 3 - 1)
        return (-d) % L

    # ---- pass 1: stack the nine q * roll(k) products in VMEM (aligned rows) -
    for kk in range(9):
        ks = k if kk == 4 else pltpu.roll(k, shift_amt(kk), axis=1)
        prods_ref[pl.ds(kk * width, width), :] = q * ks

    # All window/head logits in ONE MXU matmul (K = 9*width).  The pos term is
    # a second matmul on q.  The zero-pad mask multiplies only the k part
    # (pos is added everywhere, matching Unfold-with-zero-padding + pos).
    logits_ref[...] = (
        mask_ref[...] * jnp.dot(head_sel_ref[...], prods_ref[...],
                                preferred_element_type=jnp.float32)
        + jnp.dot(pos_mat_ref[...], q, preferred_element_type=jnp.float32))

    # ---- softmax over the 9 window positions + aggregation of zero-padded v -
    m = logits_ref[pl.ds(0, hn_pad), :]
    for kk in range(1, 9):
        m = jnp.maximum(m, logits_ref[pl.ds(kk * hn_pad, hn_pad), :])

    denom = jnp.zeros((hn_pad, L), jnp.float32)
    acc = jnp.zeros((width, L), jnp.float32)
    for kk in range(9):
        e = jnp.exp(logits_ref[pl.ds(kk * hn_pad, hn_pad), :] - m)   # (hn_pad, L)
        denom = denom + e
        if kk != 4:                      # zero-padded v: mask the attention row
            e = e * mask_ref[pl.ds(kk * hn_pad, hn_pad), :]
        a_full = jnp.dot(expand_ref[...], e,
                         preferred_element_type=jnp.float32)         # (width, L)
        vs = v if kk == 4 else pltpu.roll(v, shift_amt(kk), axis=1)
        acc = acc + a_full * vs
    # 1/denominator factored out of the window sum; head->channel expand on MXU.
    acc = acc * jnp.dot(expand_ref[...], pl.reciprocal(denom, approx=True),
                        preferred_element_type=jnp.float32)

    # ---- bn on attention output + relu ---------------------------------------
    att = jnp.maximum(acc * sa_ref[...] + ba_ref[...], 0.0)

    # ---- conv3 (1x1) + folded bn3 + residual add + relu -----------------------
    out = (jnp.dot(w3_ref[...], att.astype(mm),
                   preferred_element_type=jnp.float32)
           + b3_ref[...] + x_ref[...])
    o_ref[...] = jnp.maximum(out, 0.0).astype(o_ref.dtype)


# ----------------------------------------------------------------------------
# Host-side helpers
# ----------------------------------------------------------------------------
def _window_masks_np(H, W, hn_pad, images_per_block):
    """mask[kk*hn_pad + h, p] = 1 if pixel p shifted by (kh-1, kw-1) stays in-image."""
    HW = H * W
    hh = np.arange(HW) // W
    ww = np.arange(HW) % W
    m = np.zeros((9 * hn_pad, HW), np.float32)
    for kk in range(9):
        dh, dw = kk // 3 - 1, kk % 3 - 1
        valid = ((hh + dh >= 0) & (hh + dh < H) & (ww + dw >= 0) & (ww + dw < W))
        m[kk * hn_pad:(kk + 1) * hn_pad, :] = valid.astype(np.float32)[None, :]
    return np.tile(m, (1, images_per_block))


def fold_params(p, *, head_num, mm_dtype=jnp.bfloat16):
    """Fold inference BN into the 1x1 convs, fuse q/k/v, and build the
    head-selection / pos / expand matrices consumed by the in-kernel matmuls."""
    cin, width = p["w1"].shape
    hn = head_num
    cg = width // hn
    hn_pad = ((hn + 7) // 8) * 8          # pad heads so sublane slices are aligned

    pos = np.asarray(p["pos"], np.float32)                    # (9, width)

    head_sel = np.zeros((9 * hn_pad, 9 * width), np.float32)  # block-diag head sums
    pos_mat = np.zeros((9 * hn_pad, width), np.float32)       # pos folded into a matmul
    for kk in range(9):
        for h in range(hn):
            r = kk * hn_pad + h
            head_sel[r, kk * width + h * cg: kk * width + (h + 1) * cg] = 1.0
            pos_mat[r, h * cg:(h + 1) * cg] = pos[kk, h * cg:(h + 1) * cg]

    # aggregation: output channel c uses attention head (c % head_num)
    expand = np.zeros((width, hn_pad), np.float32)
    expand[np.arange(width), np.arange(width) % hn] = 1.0

    wqkvt = jnp.concatenate([(p["wq"] * p["sq"][None, :]).T,
                             (p["wk"] * p["sk"][None, :]).T,
                             (p["wv"] * p["sv"][None, :]).T], axis=0)
    return {
        "w1t": (p["w1"] * p["s1"][None, :]).T.astype(mm_dtype),   # (width, Cin)
        "b1": p["b1"].reshape(width, 1),
        "wqkvt": wqkvt.astype(mm_dtype),                          # (3*width, width)
        "bqkv": jnp.concatenate([p["bq"], p["bk"], p["bv"]]).reshape(3 * width, 1),
        "pos_mat": jnp.asarray(pos_mat),                          # (9*hn_pad, width)
        "head_sel": jnp.asarray(head_sel),                        # (9*hn_pad, 9*width)
        "expand": jnp.asarray(expand),                            # (width, hn_pad)
        "sa": p["sa"].reshape(width, 1),
        "ba": p["ba"].reshape(width, 1),
        "w3t": (p["w3"] * p["s3"][None, :]).T.astype(mm_dtype),   # (Cin, width)
        "b3": p["b3"].reshape(cin, 1),
    }


def bottleneck_forward(x, fp, *, images_per_block=None):
    """x: (B, Cin, H, W) float32 NCHW.  fp: folded params from fold_params()."""
    B, Cin, H, W = x.shape
    HW = H * W
    width = fp["w1t"].shape[0]
    hn_pad = fp["expand"].shape[1]

    # Whole images per lane tile (rolls must not wrap inside an image).  Cap the
    # tile at ~4096 lanes so double-buffered in/out blocks + the (9*width, L)
    # scratch fit comfortably in VMEM (v7x has 64 MiB), and keep >= 2 grid steps
    # when possible so the DMA pipeline has a neighbour to overlap with.
    if images_per_block is None:
        ipb = max(1, min(max(1, 4096 // HW), max(1, B // 2)))
    else:
        ipb = max(1, min(images_per_block, B))
    while B % ipb:
        ipb -= 1
    L = ipb * HW
    n_blocks = B // ipb

    mask = jnp.asarray(_window_masks_np(H, W, hn_pad, ipb))        # (9*hn_pad, L)

    # pack images along the lane axis: (B, Cin, H, W) -> (Cin, B*H*W)
    x2 = jnp.transpose(x, (1, 0, 2, 3)).reshape(Cin, B * HW)

    kernel = functools.partial(_bottleneck_kernel, W=W)
    out = pl.pallas_call(
        kernel,
        out_shape=jax.ShapeDtypeStruct((Cin, B * HW), jnp.float32),
        grid=(n_blocks,),
        in_specs=[
            pl.BlockSpec((Cin, L), lambda i: (0, i)),                 # x (packed)
            pl.BlockSpec((width, Cin), lambda i: (0, 0)),             # w1t
            pl.BlockSpec((width, 1), lambda i: (0, 0)),               # b1
            pl.BlockSpec((3 * width, width), lambda i: (0, 0)),       # wqkvt
            pl.BlockSpec((3 * width, 1), lambda i: (0, 0)),           # bqkv
            pl.BlockSpec((9 * hn_pad, width), lambda i: (0, 0)),      # pos_mat
            pl.BlockSpec((9 * hn_pad, 9 * width), lambda i: (0, 0)),  # head_sel
            pl.BlockSpec((width, hn_pad), lambda i: (0, 0)),          # expand
            pl.BlockSpec((9 * hn_pad, L), lambda i: (0, 0)),          # boundary mask
            pl.BlockSpec((width, 1), lambda i: (0, 0)),               # sa
            pl.BlockSpec((width, 1), lambda i: (0, 0)),               # ba
            pl.BlockSpec((Cin, width), lambda i: (0, 0)),             # w3t
            pl.BlockSpec((Cin, 1), lambda i: (0, 0)),                 # b3
        ],
        out_specs=pl.BlockSpec((Cin, L), lambda i: (0, i)),
        scratch_shapes=[
            pltpu.VMEM((9 * width, L), jnp.float32),   # stacked q * roll(k) products
            pltpu.VMEM((9 * hn_pad, L), jnp.float32),  # attention logits
        ],
        compiler_params=pltpu.CompilerParams(
            dimension_semantics=("parallel",)),
    )(x2, fp["w1t"], fp["b1"], fp["wqkvt"], fp["bqkv"], fp["pos_mat"],
      fp["head_sel"], fp["expand"], mask, fp["sa"], fp["ba"], fp["w3t"], fp["b3"])

    return jnp.transpose(out.reshape(Cin, B, H, W), (1, 0, 2, 3))


# ----------------------------------------------------------------------------
# Pure-JAX reference (NHWC).  mm_dtype rounds the matmul operands the same way
# the kernel does (bf16 weights/activations, f32 accumulation); f32 = exact.
# ----------------------------------------------------------------------------
def ref_forward(x_nhwc, p, hn, mm_dtype=jnp.float32):
    B, H, W, Cin = x_nhwc.shape

    def conv_bn(x2, w, s, b, relu):
        wf = (w * s[None, :]).astype(mm_dtype).astype(jnp.float32)
        y = x2.astype(mm_dtype).astype(jnp.float32) @ wf + b[None, :]
        return jnp.maximum(y, 0.0) if relu else y

    x2 = x_nhwc.reshape(-1, Cin)
    y = conv_bn(x2, p["w1"], p["s1"], p["b1"], True)
    C = p["w1"].shape[1]
    q = conv_bn(y, p["wq"], p["sq"], p["bq"], True).reshape(B, H, W, C)
    k = conv_bn(y, p["wk"], p["sk"], p["bk"], True).reshape(B, H, W, C)
    v = conv_bn(y, p["wv"], p["sv"], p["bv"], False).reshape(B, H, W, C)
    kpad = jnp.pad(k, ((0, 0), (1, 1), (1, 1), (0, 0)))
    vpad = jnp.pad(v, ((0, 0), (1, 1), (1, 1), (0, 0)))
    logits = []
    for kk in range(9):
        kh, kw = kk // 3, kk % 3
        ksh = kpad[:, kh:kh + H, kw:kw + W, :] + p["pos"][kk][None, None, None, :]
        logits.append((q * ksh).reshape(B, H, W, hn, C // hn).sum(-1))
    attn = jax.nn.softmax(jnp.stack(logits, axis=-1), axis=-1)       # (B,H,W,hn,9)
    acc = jnp.zeros((B, H, W, C), jnp.float32)
    for kk in range(9):
        kh, kw = kk // 3, kk % 3
        a_full = jnp.tile(attn[..., kk], (1, 1, 1, C // hn))         # chan c -> head c%hn
        acc = acc + a_full * vpad[:, kh:kh + H, kw:kw + W, :]
    att = jnp.maximum(acc * p["sa"] + p["ba"], 0.0)
    y3 = conv_bn(att.reshape(-1, C), p["w3"], p["s3"], p["b3"], False) + x2
    return jnp.maximum(y3, 0.0).reshape(B, H, W, Cin)


# ----------------------------------------------------------------------------
# Deterministic synthetic parameters
# ----------------------------------------------------------------------------
def make_bn(key, c):
    k1, k2, k3, k4 = jax.random.split(key, 4)
    gamma = 1.0 + 0.1 * jax.random.normal(k1, (c,))
    beta = 0.05 * jax.random.normal(k2, (c,))
    mean = 0.1 * jax.random.normal(k3, (c,))
    var = jax.random.uniform(k4, (c,), minval=0.5, maxval=1.5)
    scale = gamma / jnp.sqrt(var + 1e-5)
    bias = beta - mean * scale
    return scale.astype(jnp.float32), bias.astype(jnp.float32)


if __name__ == "__main__":
    B, H, W = 2, 16, 16
    planes = 16
    width = planes            # base_width=64, cardinality=1, reduce_first=1
    inplanes = planes * 4     # = outplanes so the residual add is shape-valid
    hn = width // 8           # head_num of SelfAttLayer

    key = jax.random.PRNGKey(0)
    ks = jax.random.split(key, 16)

    p = {}
    p["w1"] = 0.1 * jax.random.normal(ks[0], (inplanes, width), jnp.float32)
    p["s1"], p["b1"] = make_bn(ks[1], width)
    p["wq"] = 0.1 * jax.random.normal(ks[2], (width, width), jnp.float32)
    p["sq"], p["bq"] = make_bn(ks[3], width)
    p["wk"] = 0.1 * jax.random.normal(ks[4], (width, width), jnp.float32)
    p["sk"], p["bk"] = make_bn(ks[5], width)
    p["wv"] = 0.1 * jax.random.normal(ks[6], (width, width), jnp.float32)
    p["sv"], p["bv"] = make_bn(ks[7], width)
    pos_h = jax.random.normal(ks[8], (width, 3), jnp.float32)
    pos_w = jax.random.normal(ks[9], (width, 3), jnp.float32)
    # pos[kh*3+kw, c] = pos_h[c, kh] + pos_w[c, kw]
    p["pos"] = (pos_h[:, :, None] + pos_w[:, None, :]).reshape(width, 9).T
    p["sa"], p["ba"] = make_bn(ks[10], width)
    p["w3"] = 0.1 * jax.random.normal(ks[11], (width, inplanes), jnp.float32)
    p["s3"], p["b3"] = make_bn(ks[12], inplanes)

    # PyTorch-layout input (B, C, H, W)
    x = jax.random.normal(ks[13], (B, inplanes, H, W), jnp.float32)

    fp = fold_params(p, head_num=hn, mm_dtype=jnp.bfloat16)

    forward = jax.jit(bottleneck_forward)
    out = jax.block_until_ready(forward(x, fp))
    assert out.shape == (B, inplanes, H, W)

    x_nhwc = jnp.transpose(x, (0, 2, 3, 1))
    # matched-precision reference (same bf16 rounding of the matmul operands)
    ref_match = jnp.transpose(ref_forward(x_nhwc, p, hn, jnp.bfloat16), (0, 3, 1, 2))
    # exact f32 reference (original module math); bounds the bf16 quantization error
    ref_exact = jnp.transpose(ref_forward(x_nhwc, p, hn, jnp.float32), (0, 3, 1, 2))

    err_match = float(jnp.max(jnp.abs(out - ref_match)))
    err_exact = float(jnp.max(jnp.abs(out - ref_exact)))
    assert err_match < 5e-3, f"mismatch vs matched-precision reference: {err_match}"
    assert err_exact < 5e-2, f"mismatch vs f32 reference: {err_exact}"
    print("KERNEL_OK")
</pallas_src>

<mosaic_0001>
module attributes {stable_mosaic.version = 11 : i64} {
  func.func @_bottleneck_kernel(%arg0: i32, %arg1: memref<64x256xf32, #tpu.memory_space<vmem>>, %arg2: memref<16x64xbf16, #tpu.memory_space<vmem>>, %arg3: memref<16x1xf32, #tpu.memory_space<vmem>>, %arg4: memref<48x16xbf16, #tpu.memory_space<vmem>>, %arg5: memref<48x1xf32, #tpu.memory_space<vmem>>, %arg6: memref<72x16xf32, #tpu.memory_space<vmem>>, %arg7: memref<72x144xf32, #tpu.memory_space<vmem>>, %arg8: memref<16x8xf32, #tpu.memory_space<vmem>>, %arg9: memref<72x256xf32, #tpu.memory_space<vmem>>, %arg10: memref<16x1xf32, #tpu.memory_space<vmem>>, %arg11: memref<16x1xf32, #tpu.memory_space<vmem>>, %arg12: memref<64x16xbf16, #tpu.memory_space<vmem>>, %arg13: memref<64x1xf32, #tpu.memory_space<vmem>>, %arg14: memref<64x256xf32, #tpu.memory_space<vmem>>, %arg15: memref<144x256xf32, #tpu.memory_space<vmem>>, %arg16: memref<72x256xf32, #tpu.memory_space<vmem>>) attributes {dimension_semantics = [#tpu.dimension_semantics<parallel>], iteration_bounds = array<i64: 2>, scalar_prefetch = 0 : i64, scratch_operands = 2 : i64, tpu.core_type = #tpu.core_type<tc>, window_params = [{transform_indices = @transform_0, window_bounds = array<i64: 64, 256>}, {pipeline_mode = #tpu.pipeline_mode<synchronous>, transform_indices = @transform_1, window_bounds = array<i64: 16, 64>}, {pipeline_mode = #tpu.pipeline_mode<synchronous>, transform_indices = @transform_2, window_bounds = array<i64: 16, 1>}, {pipeline_mode = #tpu.pipeline_mode<synchronous>, transform_indices = @transform_3, window_bounds = array<i64: 48, 16>}, {pipeline_mode = #tpu.pipeline_mode<synchronous>, transform_indices = @transform_4, window_bounds = array<i64: 48, 1>}, {pipeline_mode = #tpu.pipeline_mode<synchronous>, transform_indices = @transform_5, window_bounds = array<i64: 72, 16>}, {pipeline_mode = #tpu.pipeline_mode<synchronous>, transform_indices = @transform_6, window_bounds = array<i64: 72, 144>}, {pipeline_mode = #tpu.pipeline_mode<synchronous>, transform_indices = @transform_7, window_bounds = array<i64: 16, 8>}, {pipeline_mode = #tpu.pipeline_mode<synchronous>, transform_indices = @transform_8, window_bounds = array<i64: 72, 256>}, {pipeline_mode = #tpu.pipeline_mode<synchronous>, transform_indices = @transform_9, window_bounds = array<i64: 16, 1>}, {pipeline_mode = #tpu.pipeline_mode<synchronous>, transform_indices = @transform_10, window_bounds = array<i64: 16, 1>}, {pipeline_mode = #tpu.pipeline_mode<synchronous>, transform_indices = @transform_11, window_bounds = array<i64: 64, 16>}, {pipeline_mode = #tpu.pipeline_mode<synchronous>, transform_indices = @transform_12, window_bounds = array<i64: 64, 1>}, {transform_indices = @transform_13, window_bounds = array<i64: 64, 256>}]} {
    %c0 = arith.constant 0 : index
    %c0_0 = arith.constant 0 : index
    %0 = vector.load %arg2[%c0, %c0_0] : memref<16x64xbf16, #tpu.memory_space<vmem>>, vector<16x64xbf16>
    %c0_1 = arith.constant 0 : index
    %c0_2 = arith.constant 0 : index
    %1 = vector.load %arg1[%c0_1, %c0_2] : memref<64x256xf32, #tpu.memory_space<vmem>>, vector<64x256xf32>
    %2 = arith.truncf %1 : vector<64x256xf32> to vector<64x256xbf16>
    %cst = arith.constant dense<0.000000e+00> : vector<16x256xf32>
    %3 = tpu.matmul %0, %2, %cst {dimension_numbers = #tpu.dot_dimension_numbers<[1], [0], [0], [1], [0, 0, 1, 1], [], []>} : vector<16x64xbf16>, vector<64x256xbf16>, vector<16x256xf32> -> vector<16x256xf32>
    %c0_3 = arith.constant 0 : index
    %c0_4 = arith.constant 0 : index
    %4 = vector.load %arg3[%c0_3, %c0_4] : memref<16x1xf32, #tpu.memory_space<vmem>>, vector<16x1xf32>
    %5 = vector.broadcast %4 : vector<16x1xf32> to vector<16x256xf32>
    %6 = arith.addf %3, %5 : vector<16x256xf32>
    %cst_5 = arith.constant 0.000000e+00 : f32
    %7 = vector.broadcast %cst_5 : f32 to vector<16x256xf32>
    %8 = arith.maximumf %6, %7 : vector<16x256xf32>
    %c0_6 = arith.constant 0 : index
    %c0_7 = arith.constant 0 : index
    %9 = vector.load %arg4[%c0_6, %c0_7] : memref<48x16xbf16, #tpu.memory_space<vmem>>, vector<48x16xbf16>
    %10 = arith.truncf %8 : vector<16x256xf32> to vector<16x256xbf16>
    %cst_8 = arith.constant dense<0.000000e+00> : vector<48x256xf32>
    %11 = tpu.matmul %9, %10, %cst_8 {dimension_numbers = #tpu.dot_dimension_numbers<[1], [0], [0], [1], [0, 0, 1, 1], [], []>} : vector<48x16xbf16>, vector<16x256xbf16>, vector<48x256xf32> -> vector<48x256xf32>
    %c0_9 = arith.constant 0 : index
    %c0_10 = arith.constant 0 : index
    %12 = vector.load %arg5[%c0_9, %c0_10] : memref<48x1xf32, #tpu.memory_space<vmem>>, vector<48x1xf32>
    %13 = vector.broadcast %12 : vector<48x1xf32> to vector<48x256xf32>
    %14 = arith.addf %11, %13 : vector<48x256xf32>
    %15 = vector.extract_strided_slice %14 {offsets = [0, 0], sizes = [32, 256], strides = [1, 1]} : vector<48x256xf32> to vector<32x256xf32>
    %cst_11 = arith.constant 0.000000e+00 : f32
    %16 = vector.broadcast %cst_11 : f32 to vector<32x256xf32>
    %17 = arith.maximumf %15, %16 : vector<32x256xf32>
    %18 = vector.extract_strided_slice %17 {offsets = [0, 0], sizes = [16, 256], strides = [1, 1]} : vector<32x256xf32> to vector<16x256xf32>
    %19 = vector.extract_strided_slice %17 {offsets = [16, 0], sizes = [16, 256], strides = [1, 1]} : vector<32x256xf32> to vector<16x256xf32>
    %20 = vector.extract_strided_slice %14 {offsets = [32, 0], sizes = [16, 256], strides = [1, 1]} : vector<48x256xf32> to vector<16x256xf32>
    %c17_i32 = arith.constant 17 : i32
    %21 = tpu.dynamic_rotate %19 by %c17_i32 dim 1 : vector<16x256xf32>, i32 -> vector<16x256xf32>
    %22 = arith.mulf %18, %21 : vector<16x256xf32>
    %c0_12 = arith.constant 0 : index
    %c0_13 = arith.constant 0 : index
    %23 = vector.load %arg15[%c0_12, %c0_13] : memref<144x256xf32, #tpu.memory_space<vmem>>, vector<16x256xf32>
    tpu.vector_store %arg15[%c0_12, %c0_13], %22 {strides = array<i32>} : memref<144x256xf32, #tpu.memory_space<vmem>>, vector<16x256xf32>,
    %c16_i32 = arith.constant 16 : i32
    %24 = tpu.dynamic_rotate %19 by %c16_i32 dim 1 : vector<16x256xf32>, i32 -> vector<16x256xf32>
    %25 = arith.mulf %18, %24 : vector<16x256xf32>
    %c16 = arith.constant 16 : index
    %c0_14 = arith.constant 0 : index
    %26 = vector.load %arg15[%c16, %c0_14] : memref<144x256xf32, #tpu.memory_space<vmem>>, vector<16x256xf32>
    tpu.vector_store %arg15[%c16, %c0_14], %25 {strides = array<i32>} : memref<144x256xf32, #tpu.memory_space<vmem>>, vector<16x256xf32>,
    %c15_i32 = arith.constant 15 : i32
    %27 = tpu.dynamic_rotate %19 by %c15_i32 dim 1 : vector<16x256xf32>, i32 -> vector<16x256xf32>
    %28 = arith.mulf %18, %27 : vector<16x256xf32>
    %c32 = arith.constant 32 : index
    %c0_15 = arith.constant 0 : index
    %29 = vector.load %arg15[%c32, %c0_15] : memref<144x256xf32, #tpu.memory_space<vmem>>, vector<16x256xf32>
    tpu.vector_store %arg15[%c32, %c0_15], %28 {strides = array<i32>} : memref<144x256xf32, #tpu.memory_space<vmem>>, vector<16x256xf32>,
    %c1_i32 = arith.constant 1 : i32
    %30 = tpu.dynamic_rotate %19 by %c1_i32 dim 1 : vector<16x256xf32>, i32 -> vector<16x256xf32>
    %31 = arith.mulf %18, %30 : vector<16x256xf32>
    %c48 = arith.constant 48 : index
    %c0_16 = arith.constant 0 : index
    %32 = vector.load %arg15[%c48, %c0_16] : memref<144x256xf32, #tpu.memory_space<vmem>>, vector<16x256xf32>
    tpu.vector_store %arg15[%c48, %c0_16], %31 {strides = array<i32>} : memref<144x256xf32, #tpu.memory_space<vmem>>, vector<16x256xf32>,
    %33 = arith.mulf %18, %19 : vector<16x256xf32>
    %c64 = arith.constant 64 : index
    %c0_17 = arith.constant 0 : index
    %34 = vector.load %arg15[%c64, %c0_17] : memref<144x256xf32, #tpu.memory_space<vmem>>, vector<16x256xf32>
    tpu.vector_store %arg15[%c64, %c0_17], %33 {strides = array<i32>} : memref<144x256xf32, #tpu.memory_space<vmem>>, vector<16x256xf32>,
    %c255_i32 = arith.constant 255 : i32
    %35 = tpu.dynamic_rotate %19 by %c255_i32 dim 1 : vector<16x256xf32>, i32 -> vector<16x256xf32>
    %36 = arith.mulf %18, %35 : vector<16x256xf32>
    %c80 = arith.constant 80 : index
    %c0_18 = arith.constant 0 : index
    %37 = vector.load %arg15[%c80, %c0_18] : memref<144x256xf32, #tpu.memory_space<vmem>>, vector<16x256xf32>
    tpu.vector_store %arg15[%c80, %c0_18], %36 {strides = array<i32>} : memref<144x256xf32, #tpu.memory_space<vmem>>, vector<16x256xf32>,
    %c241_i32 = arith.constant 241 : i32
    %38 = tpu.dynamic_rotate %19 by %c241_i32 dim 1 : vector<16x256xf32>, i32 -> vector<16x256xf32>
    %39 = arith.mulf %18, %38 : vector<16x256xf32>
    %c96 = arith.constant 96 : index
    %c0_19 = arith.constant 0 : index
    %40 = vector.load %arg15[%c96, %c0_19] : memref<144x256xf32, #tpu.memory_space<vmem>>, vector<16x256xf32>
    tpu.vector_store %arg15[%c96, %c0_19], %39 {strides = array<i32>} : memref<144x256xf32, #tpu.memory_space<vmem>>, vector<16x256xf32>,
    %c240_i32 = arith.constant 240 : i32
    %41 = tpu.dynamic_rotate %19 by %c240_i32 dim 1 : vector<16x256xf32>, i32 -> vector<16x256xf32>
    %42 = arith.mulf %18, %41 : vector<16x256xf32>
    %c112 = arith.constant 112 : index
    %c0_20 = arith.constant 0 : index
    %43 = vector.load %arg15[%c112, %c0_20] : memref<144x256xf32, #tpu.memory_space<vmem>>, vector<16x256xf32>
    tpu.vector_store %arg15[%c112, %c0_20], %42 {strides = array<i32>} : memref<144x256xf32, #tpu.memory_space<vmem>>, vector<16x256xf32>,
    %c239_i32 = arith.constant 239 : i32
    %44 = tpu.dynamic_rotate %19 by %c239_i32 dim 1 : vector<16x256xf32>, i32 -> vector<16x256xf32>
    %45 = arith.mulf %18, %44 : vector<16x256xf32>
    %c128 = arith.constant 128 : index
    %c0_21 = arith.constant 0 : index
    %46 = vector.load %arg15[%c128, %c0_21] : memref<144x256xf32, #tpu.memory_space<vmem>>, vector<16x256xf32>
    tpu.vector_store %arg15[%c128, %c0_21], %45 {strides = array<i32>} : memref<144x256xf32, #tpu.memory_space<vmem>>, vector<16x256xf32>,
    %c0_22 = arith.constant 0 : index
    %c0_23 = arith.constant 0 : index
    %47 = vector.load %arg9[%c0_22, %c0_23] : memref<72x256xf32, #tpu.memory_space<vmem>>, vector<72x256xf32>
    %c0_24 = arith.constant 0 : index
    %c0_25 = arith.constant 0 : index
    %48 = vector.load %arg7[%c0_24, %c0_25] : memref<72x144xf32, #tpu.memory_space<vmem>>, vector<72x144xf32>
    %c0_26 = arith.constant 0 : index
    %c0_27 = arith.constant 0 : index
    %49 = vector.load %arg15[%c0_26, %c0_27] : memref<144x256xf32, #tpu.memory_space<vmem>>, vector<144x256xf32>
    %cst_28 = arith.constant dense<0.000000e+00> : vector<72x256xf32>
    %50 = tpu.matmul %48, %49, %cst_28 {dimension_numbers = #tpu.dot_dimension_numbers<[1], [0], [0], [1], [0, 0, 1, 1], [], []>} : vector<72x144xf32>, vector<144x256xf32>, vector<72x256xf32> -> vector<72x256xf32>
    %51 = arith.mulf %47, %50 : vector<72x256xf32>
    %c0_29 = arith.constant 0 : index
    %c0_30 = arith.constant 0 : index
    %52 = vector.load %arg6[%c0_29, %c0_30] : memref<72x16xf32, #tpu.memory_space<vmem>>, vector<72x16xf32>
    %cst_31 = arith.constant dense<0.000000e+00> : vector<72x256xf32>
    %53 = tpu.matmul %52, %18, %cst_31 {dimension_numbers = #tpu.dot_dimension_numbers<[1], [0], [0], [1], [0, 0, 1, 1], [], []>} : vector<72x16xf32>, vector<16x256xf32>, vector<72x256xf32> -> vector<72x256xf32>
    %54 = arith.addf %51, %53 : vector<72x256xf32>
    %c0_32 = arith.constant 0 : index
    %c0_33 = arith.constant 0 : index
    %55 = vector.load %arg16[%c0_32, %c0_33] : memref<72x256xf32, #tpu.memory_space<vmem>>, vector<72x256xf32>
    tpu.vector_store %arg16[%c0_32, %c0_33], %54 {strides = array<i32>} : memref<72x256xf32, #tpu.memory_space<vmem>>, vector<72x256xf32>,
    %c0_34 = arith.constant 0 : index
    %c0_35 = arith.constant 0 : index
    %56 = vector.load %arg16[%c0_34, %c0_35] : memref<72x256xf32, #tpu.memory_space<vmem>>, vector<8x256xf32>
    %c8 = arith.constant 8 : index
    %c0_36 = arith.constant 0 : index
    %57 = vector.load %arg16[%c8, %c0_36] : memref<72x256xf32, #tpu.memory_space<vmem>>, vector<8x256xf32>
    %58 = arith.maximumf %56, %57 : vector<8x256xf32>
    %c16_37 = arith.constant 16 : index
    %c0_38 = arith.constant 0 : index
    %59 = vector.load %arg16[%c16_37, %c0_38] : memref<72x256xf32, #tpu.memory_space<vmem>>, vector<8x256xf32>
    %60 = arith.maximumf %58, %59 : vector<8x256xf32>
    %c24 = arith.constant 24 : index
    %c0_39 = arith.constant 0 : index
    %61 = vector.load %arg16[%c24, %c0_39] : memref<72x256xf32, #tpu.memory_space<vmem>>, vector<8x256xf32>
    %62 = arith.maximumf %60, %61 : vector<8x256xf32>
    %c32_40 = arith.constant 32 : index
    %c0_41 = arith.constant 0 : index
    %63 = vector.load %arg16[%c32_40, %c0_41] : memref<72x256xf32, #tpu.memory_space<vmem>>, vector<8x256xf32>
    %64 = arith.maximumf %62, %63 : vector<8x256xf32>
    %c40 = arith.constant 40 : index
    %c0_42 = arith.constant 0 : index
    %65 = vector.load %arg16[%c40, %c0_42] : memref<72x256xf32, #tpu.memory_space<vmem>>, vector<8x256xf32>
    %66 = arith.maximumf %64, %65 : vector<8x256xf32>
    %c48_43 = arith.constant 48 : index
    %c0_44 = arith.constant 0 : index
    %67 = vector.load %arg16[%c48_43, %c0_44] : memref<72x256xf32, #tpu.memory_space<vmem>>, vector<8x256xf32>
    %68 = arith.maximumf %66, %67 : vector<8x256xf32>
    %c56 = arith.constant 56 : index
    %c0_45 = arith.constant 0 : index
    %69 = vector.load %arg16[%c56, %c0_45] : memref<72x256xf32, #tpu.memory_space<vmem>>, vector<8x256xf32>
    %70 = arith.maximumf %68, %69 : vector<8x256xf32>
    %c64_46 = arith.constant 64 : index
    %c0_47 = arith.constant 0 : index
    %71 = vector.load %arg16[%c64_46, %c0_47] : memref<72x256xf32, #tpu.memory_space<vmem>>, vector<8x256xf32>
    %72 = arith.maximumf %70, %71 : vector<8x256xf32>
    %cst_48 = arith.constant 0.000000e+00 : f32
    %73 = vector.broadcast %cst_48 : f32 to vector<8x256xf32>
    %cst_49 = arith.constant 0.000000e+00 : f32
    %74 = vector.broadcast %cst_49 : f32 to vector<16x256xf32>
    %c0_50 = arith.constant 0 : index
    %c0_51 = arith.constant 0 : index
    %75 = vector.load %arg16[%c0_50, %c0_51] : memref<72x256xf32, #tpu.memory_space<vmem>>, vector<8x256xf32>
    %76 = arith.subf %75, %72 : vector<8x256xf32>
    %77 = math.exp %76 : vector<8x256xf32>
    %78 = arith.addf %73, %77 : vector<8x256xf32>
    %c0_52 = arith.constant 0 : index
    %c0_53 = arith.constant 0 : index
    %79 = vector.load %arg9[%c0_52, %c0_53] : memref<72x256xf32, #tpu.memory_space<vmem>>, vector<8x256xf32>
    %80 = arith.mulf %77, %79 : vector<8x256xf32>
    %c0_54 = arith.constant 0 : index
    %c0_55 = arith.constant 0 : index
    %81 = vector.load %arg8[%c0_54, %c0_55] : memref<16x8xf32, #tpu.memory_space<vmem>>, vector<16x8xf32>
    %cst_56 = arith.constant dense<0.000000e+00> : vector<16x256xf32>
    %82 = tpu.matmul %81, %80, %cst_56 {dimension_numbers = #tpu.dot_dimension_numbers<[1], [0], [0], [1], [0, 0, 1, 1], [], []>} : vector<16x8xf32>, vector<8x256xf32>, vector<16x256xf32> -> vector<16x256xf32>
    %c17_i32_57 = arith.constant 17 : i32
    %83 = tpu.dynamic_rotate %20 by %c17_i32_57 dim 1 : vector<16x256xf32>, i32 -> vector<16x256xf32>
    %84 = arith.mulf %82, %83 : vector<16x256xf32>
    %85 = arith.addf %74, %84 : vector<16x256xf32>
    %c8_58 = arith.constant 8 : index
    %c0_59 = arith.constant 0 : index
    %86 = vector.load %arg16[%c8_58, %c0_59] : memref<72x256xf32, #tpu.memory_space<vmem>>, vector<8x256xf32>
    %87 = arith.subf %86, %72 : vector<8x256xf32>
    %88 = math.exp %87 : vector<8x256xf32>
    %89 = arith.addf %78, %88 : vector<8x256xf32>
    %c8_60 = arith.constant 8 : index
    %c0_61 = arith.constant 0 : index
    %90 = vector.load %arg9[%c8_60, %c0_61] : memref<72x256xf32, #tpu.memory_space<vmem>>, vector<8x256xf32>
    %91 = arith.mulf %88, %90 : vector<8x256xf32>
    %c0_62 = arith.constant 0 : index
    %c0_63 = arith.constant 0 : index
    %92 = vector.load %arg8[%c0_62, %c0_63] : memref<16x8xf32, #tpu.memory_space<vmem>>, vector<16x8xf32>
    %cst_64 = arith.constant dense<0.000000e+00> : vector<16x256xf32>
    %93 = tpu.matmul %92, %91, %cst_64 {dimension_numbers = #tpu.dot_dimension_numbers<[1], [0], [0], [1], [0, 0, 1, 1], [], []>} : vector<16x8xf32>, vector<8x256xf32>, vector<16x256xf32> -> vector<16x256xf32>
    %c16_i32_65 = arith.constant 16 : i32
    %94 = tpu.dynamic_rotate %20 by %c16_i32_65 dim 1 : vector<16x256xf32>, i32 -> vector<16x256xf32>
    %95 = arith.mulf %93, %94 : vector<16x256xf32>
    %96 = arith.addf %85, %95 : vector<16x256xf32>
    %c16_66 = arith.constant 16 : index
    %c0_67 = arith.constant 0 : index
    %97 = vector.load %arg16[%c16_66, %c0_67] : memref<72x256xf32, #tpu.memory_space<vmem>>, vector<8x256xf32>
    %98 = arith.subf %97, %72 : vector<8x256xf32>
    %99 = math.exp %98 : vector<8x256xf32>
    %100 = arith.addf %89, %99 : vector<8x256xf32>
    %c16_68 = arith.constant 16 : index
    %c0_69 = arith.constant 0 : index
    %101 = vector.load %arg9[%c16_68, %c0_69] : memref<72x256xf32, #tpu.memory_space<vmem>>, vector<8x256xf32>
    %102 = arith.mulf %99, %101 : vector<8x256xf32>
    %c0_70 = arith.constant 0 : index
    %c0_71 = arith.constant 0 : index
    %103 = vector.load %arg8[%c0_70, %c0_71] : memref<16x8xf32, #tpu.memory_space<vmem>>, vector<16x8xf32>
    %cst_72 = arith.constant dense<0.000000e+00> : vector<16x256xf32>
    %104 = tpu.matmul %103, %102, %cst_72 {dimension_numbers = #tpu.dot_dimension_numbers<[1], [0], [0], [1], [0, 0, 1, 1], [], []>} : vector<16x8xf32>, vector<8x256xf32>, vector<16x256xf32> -> vector<16x256xf32>
    %c15_i32_73 = arith.constant 15 : i32
    %105 = tpu.dynamic_rotate %20 by %c15_i32_73 dim 1 : vector<16x256xf32>, i32 -> vector<16x256xf32>
    %106 = arith.mulf %104, %105 : vector<16x256xf32>
    %107 = arith.addf %96, %106 : vector<16x256xf32>
    %c24_74 = arith.constant 24 : index
    %c0_75 = arith.constant 0 : index
    %108 = vector.load %arg16[%c24_74, %c0_75] : memref<72x256xf32, #tpu.memory_space<vmem>>, vector<8x256xf32>
    %109 = arith.subf %108, %72 : vector<8x256xf32>
    %110 = math.exp %109 : vector<8x256xf32>
    %111 = arith.addf %100, %110 : vector<8x256xf32>
    %c24_76 = arith.constant 24 : index
    %c0_77 = arith.constant 0 : index
    %112 = vector.load %arg9[%c24_76, %c0_77] : memref<72x256xf32, #tpu.memory_space<vmem>>, vector<8x256xf32>
    %113 = arith.mulf %110, %112 : vector<8x256xf32>
    %c0_78 = arith.constant 0 : index
    %c0_79 = arith.constant 0 : index
    %114 = vector.load %arg8[%c0_78, %c0_79] : memref<16x8xf32, #tpu.memory_space<vmem>>, vector<16x8xf32>
    %cst_80 = arith.constant dense<0.000000e+00> : vector<16x256xf32>
    %115 = tpu.matmul %114, %113, %cst_80 {dimension_numbers = #tpu.dot_dimension_numbers<[1], [0], [0], [1], [0, 0, 1, 1], [], []>} : vector<16x8xf32>, vector<8x256xf32>, vector<16x256xf32> -> vector<16x256xf32>
    %c1_i32_81 = arith.constant 1 : i32
    %116 = tpu.dynamic_rotate %20 by %c1_i32_81 dim 1 : vector<16x256xf32>, i32 -> vector<16x256xf32>
    %117 = arith.mulf %115, %116 : vector<16x256xf32>
    %118 = arith.addf %107, %117 : vector<16x256xf32>
    %c32_82 = arith.constant 32 : index
    %c0_83 = arith.constant 0 : index
    %119 = vector.load %arg16[%c32_82, %c0_83] : memref<72x256xf32, #tpu.memory_space<vmem>>, vector<8x256xf32>
    %120 = arith.subf %119, %72 : vector<8x256xf32>
    %121 = math.exp %120 : vector<8x256xf32>
    %122 = arith.addf %111, %121 : vector<8x256xf32>
    %c0_84 = arith.constant 0 : index
    %c0_85 = arith.constant 0 : index
    %123 = vector.load %arg8[%c0_84, %c0_85] : memref<16x8xf32, #tpu.memory_space<vmem>>, vector<16x8xf32>
    %cst_86 = arith.constant dense<0.000000e+00> : vector<16x256xf32>
    %124 = tpu.matmul %123, %121, %cst_86 {dimension_numbers = #tpu.dot_dimension_numbers<[1], [0], [0], [1], [0, 0, 1, 1], [], []>} : vector<16x8xf32>, vector<8x256xf32>, vector<16x256xf32> -> vector<16x256xf32>
    %125 = arith.mulf %124, %20 : vector<16x256xf32>
    %126 = arith.addf %118, %125 : vector<16x256xf32>
    %c40_87 = arith.constant 40 : index
    %c0_88 = arith.constant 0 : index
    %127 = vector.load %arg16[%c40_87, %c0_88] : memref<72x256xf32, #tpu.memory_space<vmem>>, vector<8x256xf32>
    %128 = arith.subf %127, %72 : vector<8x256xf32>
    %129 = math.exp %128 : vector<8x256xf32>
    %130 = arith.addf %122, %129 : vector<8x256xf32>
    %c40_89 = arith.constant 40 : index
    %c0_90 = arith.constant 0 : index
    %131 = vector.load %arg9[%c40_89, %c0_90] : memref<72x256xf32, #tpu.memory_space<vmem>>, vector<8x256xf32>
    %132 = arith.mulf %129, %131 : vector<8x256xf32>
    %c0_91 = arith.constant 0 : index
    %c0_92 = arith.constant 0 : index
    %133 = vector.load %arg8[%c0_91, %c0_92] : memref<16x8xf32, #tpu.memory_space<vmem>>, vector<16x8xf32>
    %cst_93 = arith.constant dense<0.000000e+00> : vector<16x256xf32>
    %134 = tpu.matmul %133, %132, %cst_93 {dimension_numbers = #tpu.dot_dimension_numbers<[1], [0], [0], [1], [0, 0, 1, 1], [], []>} : vector<16x8xf32>, vector<8x256xf32>, vector<16x256xf32> -> vector<16x256xf32>
    %c255_i32_94 = arith.constant 255 : i32
    %135 = tpu.dynamic_rotate %20 by %c255_i32_94 dim 1 : vector<16x256xf32>, i32 -> vector<16x256xf32>
    %136 = arith.mulf %134, %135 : vector<16x256xf32>
    %137 = arith.addf %126, %136 : vector<16x256xf32>
    %c48_95 = arith.constant 48 : index
    %c0_96 = arith.constant 0 : index
    %138 = vector.load %arg16[%c48_95, %c0_96] : memref<72x256xf32, #tpu.memory_space<vmem>>, vector<8x256xf32>
    %139 = arith.subf %138, %72 : vector<8x256xf32>
    %140 = math.exp %139 : vector<8x256xf32>
    %141 = arith.addf %130, %140 : vector<8x256xf32>
    %c48_97 = arith.constant 48 : index
    %c0_98 = arith.constant 0 : index
    %142 = vector.load %arg9[%c48_97, %c0_98] : memref<72x256xf32, #tpu.memory_space<vmem>>, vector<8x256xf32>
    %143 = arith.mulf %140, %142 : vector<8x256xf32>
    %c0_99 = arith.constant 0 : index
    %c0_100 = arith.constant 0 : index
    %144 = vector.load %arg8[%c0_99, %c0_100] : memref<16x8xf32, #tpu.memory_space<vmem>>, vector<16x8xf32>
    %cst_101 = arith.constant dense<0.000000e+00> : vector<16x256xf32>
    %145 = tpu.matmul %144, %143, %cst_101 {dimension_numbers = #tpu.dot_dimension_numbers<[1], [0], [0], [1], [0, 0, 1, 1], [], []>} : vector<16x8xf32>, vector<8x256xf32>, vector<16x256xf32> -> vector<16x256xf32>
    %c241_i32_102 = arith.constant 241 : i32
    %146 = tpu.dynamic_rotate %20 by %c241_i32_102 dim 1 : vector<16x256xf32>, i32 -> vector<16x256xf32>
    %147 = arith.mulf %145, %146 : vector<16x256xf32>
    %148 = arith.addf %137, %147 : vector<16x256xf32>
    %c56_103 = arith.constant 56 : index
    %c0_104 = arith.constant 0 : index
    %149 = vector.load %arg16[%c56_103, %c0_104] : memref<72x256xf32, #tpu.memory_space<vmem>>, vector<8x256xf32>
    %150 = arith.subf %149, %72 : vector<8x256xf32>
    %151 = math.exp %150 : vector<8x256xf32>
    %152 = arith.addf %141, %151 : vector<8x256xf32>
    %c56_105 = arith.constant 56 : index
    %c0_106 = arith.constant 0 : index
    %153 = vector.load %arg9[%c56_105, %c0_106] : memref<72x256xf32, #tpu.memory_space<vmem>>, vector<8x256xf32>
    %154 = arith.mulf %151, %153 : vector<8x256xf32>
    %c0_107 = arith.constant 0 : index
    %c0_108 = arith.constant 0 : index
    %155 = vector.load %arg8[%c0_107, %c0_108] : memref<16x8xf32, #tpu.memory_space<vmem>>, vector<16x8xf32>
    %cst_109 = arith.constant dense<0.000000e+00> : vector<16x256xf32>
    %156 = tpu.matmul %155, %154, %cst_109 {dimension_numbers = #tpu.dot_dimension_numbers<[1], [0], [0], [1], [0, 0, 1, 1], [], []>} : vector<16x8xf32>, vector<8x256xf32>, vector<16x256xf32> -> vector<16x256xf32>
    %c240_i32_110 = arith.constant 240 : i32
    %157 = tpu.dynamic_rotate %20 by %c240_i32_110 dim 1 : vector<16x256xf32>, i32 -> vector<16x256xf32>
    %158 = arith.mulf %156, %157 : vector<16x256xf32>
    %159 = arith.addf %148, %158 : vector<16x256xf32>
    %c64_111 = arith.constant 64 : index
    %c0_112 = arith.constant 0 : index
    %160 = vector.load %arg16[%c64_111, %c0_112] : memref<72x256xf32, #tpu.memory_space<vmem>>, vector<8x256xf32>
    %161 = arith.subf %160, %72 : vector<8x256xf32>
    %162 = math.exp %161 : vector<8x256xf32>
    %163 = arith.addf %152, %162 : vector<8x256xf32>
    %c64_113 = arith.constant 64 : index
    %c0_114 = arith.constant 0 : index
    %164 = vector.load %arg9[%c64_113, %c0_114] : memref<72x256xf32, #tpu.memory_space<vmem>>, vector<8x256xf32>
    %165 = arith.mulf %162, %164 : vector<8x256xf32>
    %c0_115 = arith.constant 0 : index
    %c0_116 = arith.constant 0 : index
    %166 = vector.load %arg8[%c0_115, %c0_116] : memref<16x8xf32, #tpu.memory_space<vmem>>, vector<16x8xf32>
    %cst_117 = arith.constant dense<0.000000e+00> : vector<16x256xf32>
    %167 = tpu.matmul %166, %165, %cst_117 {dimension_numbers = #tpu.dot_dimension_numbers<[1], [0], [0], [1], [0, 0, 1, 1], [], []>} : vector<16x8xf32>, vector<8x256xf32>, vector<16x256xf32> -> vector<16x256xf32>
    %c239_i32_118 = arith.constant 239 : i32
    %168 = tpu.dynamic_rotate %20 by %c239_i32_118 dim 1 : vector<16x256xf32>, i32 -> vector<16x256xf32>
    %169 = arith.mulf %167, %168 : vector<16x256xf32>
    %170 = arith.addf %159, %169 : vector<16x256xf32>
    %c0_119 = arith.constant 0 : index
    %c0_120 = arith.constant 0 : index
    %171 = vector.load %arg8[%c0_119, %c0_120] : memref<16x8xf32, #tpu.memory_space<vmem>>, vector<16x8xf32>
    %172 = tpu.reciprocal %163 {approx = true} : vector<8x256xf32> -> vector<8x256xf32>
    %cst_121 = arith.constant dense<0.000000e+00> : vector<16x256xf32>
    %173 = tpu.matmul %171, %172, %cst_121 {dimension_numbers = #tpu.dot_dimension_numbers<[1], [0], [0], [1], [0, 0, 1, 1], [], []>} : vector<16x8xf32>, vector<8x256xf32>, vector<16x256xf32> -> vector<16x256xf32>
    %174 = arith.mulf %170, %173 : vector<16x256xf32>
    %c0_122 = arith.constant 0 : index
    %c0_123 = arith.constant 0 : index
    %175 = vector.load %arg10[%c0_122, %c0_123] : memref<16x1xf32, #tpu.memory_space<vmem>>, vector<16x1xf32>
    %176 = vector.broadcast %175 : vector<16x1xf32> to vector<16x256xf32>
    %177 = arith.mulf %174, %176 : vector<16x256xf32>
    %c0_124 = arith.constant 0 : index
    %c0_125 = arith.constant 0 : index
    %178 = vector.load %arg11[%c0_124, %c0_125] : memref<16x1xf32, #tpu.memory_space<vmem>>, vector<16x1xf32>
    %179 = vector.broadcast %178 : vector<16x1xf32> to vector<16x256xf32>
    %180 = arith.addf %177, %179 : vector<16x256xf32>
    %cst_126 = arith.constant 0.000000e+00 : f32
    %181 = vector.broadcast %cst_126 : f32 to vector<16x256xf32>
    %182 = arith.maximumf %180, %181 : vector<16x256xf32>
    %c0_127 = arith.constant 0 : index
    %c0_128 = arith.constant 0 : index
    %183 = vector.load %arg12[%c0_127, %c0_128] : memref<64x16xbf16, #tpu.memory_space<vmem>>, vector<64x16xbf16>
    %184 = arith.truncf %182 : vector<16x256xf32> to vector<16x256xbf16>
    %cst_129 = arith.constant dense<0.000000e+00> : vector<64x256xf32>
    %185 = tpu.matmul %183, %184, %cst_129 {dimension_numbers = #tpu.dot_dimension_numbers<[1], [0], [0], [1], [0, 0, 1, 1], [], []>} : vector<64x16xbf16>, vector<16x256xbf16>, vector<64x256xf32> -> vector<64x256xf32>
    %c0_130 = arith.constant 0 : index
    %c0_131 = arith.constant 0 : index
    %186 = vector.load %arg13[%c0_130, %c0_131] : memref<64x1xf32, #tpu.memory_space<vmem>>, vector<64x1xf32>
    %187 = vector.broadcast %186 : vector<64x1xf32> to vector<64x256xf32>
    %188 = arith.addf %185, %187 : vector<64x256xf32>
    %c0_132 = arith.constant 0 : index
    %c0_133 = arith.constant 0 : index
    %189 = vector.load %arg1[%c0_132, %c0_133] : memref<64x256xf32, #tpu.memory_space<vmem>>, vector<64x256xf32>
    %190 = arith.addf %188, %189 : vector<64x256xf32>
    %cst_134 = arith.constant 0.000000e+00 : f32
    %191 = vector.broadcast %cst_134 : f32 to vector<64x256xf32>
    %192 = arith.maximumf %190, %191 : vector<64x256xf32>
    %c0_135 = arith.constant 0 : index
    %c0_136 = arith.constant 0 : index
    %193 = vector.load %arg14[%c0_135, %c0_136] : memref<64x256xf32, #tpu.memory_space<vmem>>, vector<64x256xf32>
    tpu.vector_store %arg14[%c0_135, %c0_136], %192 {strides = array<i32>} : memref<64x256xf32, #tpu.memory_space<vmem>>, vector<64x256xf32>,
    return
  }
  func.func @transform_0(%arg0: i32) -> (i32, i32) {
    %c0_i32 = arith.constant 0 : i32
    %c0_i32_0 = arith.constant 0 : i32
    return %c0_i32, %arg0 : i32, i32
  }
  func.func @transform_1(%arg0: i32) -> (i32, i32) {
    %c0_i32 = arith.constant 0 : i32
    %c0_i32_0 = arith.constant 0 : i32
    %c0_i32_1 = arith.constant 0 : i32
    return %c0_i32, %c0_i32_0 : i32, i32
  }
  func.func @transform_2(%arg0: i32) -> (i32, i32) {
    %c0_i32 = arith.constant 0 : i32
    %c0_i32_0 = arith.constant 0 : i32
    %c0_i32_1 = arith.constant 0 : i32
    return %c0_i32, %c0_i32_0 : i32, i32
  }
  func.func @transform_3(%arg0: i32) -> (i32, i32) {
    %c0_i32 = arith.constant 0 : i32
    %c0_i32_0 = arith.constant 0 : i32
    %c0_i32_1 = arith.constant 0 : i32
    return %c0_i32, %c0_i32_0 : i32, i32
  }
  func.func @transform_4(%arg0: i32) -> (i32, i32) {
    %c0_i32 = arith.constant 0 : i32
    %c0_i32_0 = arith.constant 0 : i32
    %c0_i32_1 = arith.constant 0 : i32
    return %c0_i32, %c0_i32_0 : i32, i32
  }
  func.func @transform_5(%arg0: i32) -> (i32, i32) {
    %c0_i32 = arith.constant 0 : i32
    %c0_i32_0 = arith.constant 0 : i32
    %c0_i32_1 = arith.constant 0 : i32
    return %c0_i32, %c0_i32_0 : i32, i32
  }
  func.func @transform_6(%arg0: i32) -> (i32, i32) {
    %c0_i32 = arith.constant 0 : i32
    %c0_i32_0 = arith.constant 0 : i32
    %c0_i32_1 = arith.constant 0 : i32
    return %c0_i32, %c0_i32_0 : i32, i32
  }
  func.func @transform_7(%arg0: i32) -> (i32, i32) {
    %c0_i32 = arith.constant 0 : i32
    %c0_i32_0 = arith.constant 0 : i32
    %c0_i32_1 = arith.constant 0 : i32
    return %c0_i32, %c0_i32_0 : i32, i32
  }
  func.func @transform_8(%arg0: i32) -> (i32, i32) {
    %c0_i32 = arith.constant 0 : i32
    %c0_i32_0 = arith.constant 0 : i32
    %c0_i32_1 = arith.constant 0 : i32
    return %c0_i32, %c0_i32_0 : i32, i32
  }
  func.func @transform_9(%arg0: i32) -> (i32, i32) {
    %c0_i32 = arith.constant 0 : i32
    %c0_i32_0 = arith.constant 0 : i32
    %c0_i32_1 = arith.constant 0 : i32
    return %c0_i32, %c0_i32_0 : i32, i32
  }
  func.func @transform_10(%arg0: i32) -> (i32, i32) {
    %c0_i32 = arith.constant 0 : i32
    %c0_i32_0 = arith.constant 0 : i32
    %c0_i32_1 = arith.constant 0 : i32
    return %c0_i32, %c0_i32_0 : i32, i32
  }
  func.func @transform_11(%arg0: i32) -> (i32, i32) {
    %c0_i32 = arith.constant 0 : i32
    %c0_i32_0 = arith.constant 0 : i32
    %c0_i32_1 = arith.constant 0 : i32
    return %c0_i32, %c0_i32_0 : i32, i32
  }
  func.func @transform_12(%arg0: i32) -> (i32, i32) {
    %c0_i32 = arith.constant 0 : i32
    %c0_i32_0 = arith.constant 0 : i32
    %c0_i32_1 = arith.constant 0 : i32
    return %c0_i32, %c0_i32_0 : i32, i32
  }
  func.func @transform_13(%arg0: i32) -> (i32, i32) {
    %c0_i32 = arith.constant 0 : i32
    %c0_i32_0 = arith.constant 0 : i32
    return %c0_i32, %arg0 : i32, i32
  }
}

</mosaic_0001>

<bundles_post_ra>
// kernel: bottleneck_forward.1
= control target key start
LH: loop header
LB: loop body
LE: loop exit
PB: predicated region body
PF: predicated region fallthrough
CT: control target
= control target key end

     0   :  { %s4125_s0 = inlined_call_operand.vmem [shape: f32[64,512], index: 0, kind: input, shape index: {}]   ;;  %s4126_s1 = inlined_call_operand.vmem [shape: bf16[16,64], index: 1, kind: input, shape index: {}]   ;;  %s4127_s2 = inlined_call_operand.vmem [shape: f32[16,1], index: 2, kind: input, shape index: {}]   ;;  %s4128_s3 = inlined_call_operand.vmem [shape: bf16[48,16], index: 3, kind: input, shape index: {}]   ;;  %s4129_s4 = inlined_call_operand.vmem [shape: f32[48,1], index: 4, kind: input, shape index: {}]   ;;  %s4130_s5 = inlined_call_operand.vmem [shape: f32[72,16], index: 5, kind: input, shape index: {}]   ;;  %s4131_s6 = inlined_call_operand.vmem [shape: f32[72,144], index: 6, kind: input, shape index: {}]   ;;  %s4132_s7 = inlined_call_operand.vmem [shape: f32[16,8], index: 7, kind: input, shape index: {}]   ;;  %s4133_s8 = inlined_call_operand.vmem [shape: f32[72,256], index: 8, kind: input, shape index: {}]   ;;  %s4134_s9 = inlined_call_operand.vmem [shape: f32[16,1], index: 9, kind: input, shape index: {}]   ;;  %s4135_s10 = inlined_call_operand.vmem [shape: f32[16,1], index: 10, kind: input, shape index: {}]   ;;  %s4136_s11 = inlined_call_operand.vmem [shape: bf16[64,16], index: 11, kind: input, shape index: {}]   ;;  %s4137_s12 = inlined_call_operand.vmem [shape: f32[64,1], index: 12, kind: input, shape index: {}]   ;;  %s4138_s13 = inlined_call_operand.vmem [shape: f32[64,512], index: 13, kind: output, shape index: {}]  }
   0x1   :  { %4156 = sst [smem:[#allocation6_spill]] %s4125_s0 }
   0x2   :  { %4157 = sst [smem:[#allocation7_spill]] %s4126_s1 }
   0x3   :  { %s3057_s25 = smov 0   ;;  %s3059_s26 = smov 0  }
   0x4   :  { %s3061_s27 = smov 0  }
   0x5 LB: > { %s4139_s28 = sadd.s32 4294967295, %s2975_s27   ;;  %s3074_s29 = sadd.s32 1, %s2975_s27   ;;  %s2975_s27 = sphi %s3061_s27, %s4172_s27   ;;  %s2971_s26 = sphi %s3059_s26, %s4171_s26   ;;  %s2967_s25 = sphi %s3057_s25, %s4170_s25  }
   0x6   : > { %s27_s30 = ssub.s32 %s2975_s27, %s3074_s29  ;;  %s30_s14 = sadd.s32 1, %s2971_s26 }
   0x7   : > { %p28_p0 = scmp.eq.s32.totalorder %s27_s30, 0  ;;  %p37_p1 = scmp.ne.s32.totalorder %s2971_s26, %s2967_s25 }
   0x8   : > { %p38_p2 = scmp.eq.s32.totalorder %s2975_s27, 0  ;;  %p319_p3 = scmp.eq.s32.totalorder %s4139_s28, 1 }
   0x9   : > { %s3085_s15 = scalar_select %p28_p0, %s2971_s26, %s30_s14  }
   0xa   : > { %p39_p4 = por %p38_p2, %p37_p1  ;;  %p3087_p5 = por %p319_p3, %p37_p1 }
   0xb   : > { %p2797_p6 = scmp.ge.s32.totalorder %s2975_s27, 2 }
   0xd   : > { %377 = sbr.rel (%p2797_p6) target bundleno = 36 (0x24), region = 64 }
  0x12   : > { %380 = sbr.rel (!%p39_p4) target bundleno = 36 (0x24), region = 68  ;;  %s382_s17 = sand.u32 (%p39_p4), 1, %s2971_s26  }
  0x13   : > { %s2863_s18 = sshll.u32 (%p39_p4), %s2975_s27, 4  ;;  %s2798_s19 = sshll.u32 (%p39_p4), %s382_s17, 7 }
  0x14   : > { %s4159_s0 = sld [smem:[#allocation6_spill]] (%p39_p4)  ;;  %s384_s23 = scalar_lea.vmem (%p39_p4), [#allocation4], %s2798_s19 }
  0x1a   : > { %s3097_s22 = scalar_lea.vmem %s4159_s0, %s2863_s18 }
  0x1b   : > { %v400_v0 = vld [vmem:[%s3097_s22] sm:$0xff]  ;;  %v402_v1 = vld [vmem:[%s3097_s22 + $0x8] sm:$0xff] }
  0x1c   : > { %v404_v2 = vld [vmem:[%s3097_s22 + $0x20] sm:$0xff]  ;;  %401 = vst [vmem:[%s384_s23] sm:$0xff] %v400_v0  ;;  %403 = vst [vmem:[%s384_s23 + $0x8] sm:$0xff] %v402_v1  ;;  %v406_v3 = vld [vmem:[%s3097_s22 + $0x28] sm:$0xff] }
  0x1d   : > { %405 = vst [vmem:[%s384_s23 + $0x10] sm:$0xff] %v404_v2  ;;  %v408_v4 = vld [vmem:[%s3097_s22 + $0x40] sm:$0xff]  ;;  %v410_v5 = vld [vmem:[%s3097_s22 + $0x48] sm:$0xff]  ;;  %407 = vst [vmem:[%s384_s23 + $0x18] sm:$0xff] %v406_v3 }
  0x1e   : > { %409 = vst [vmem:[%s384_s23 + $0x20] sm:$0xff] %v408_v4  ;;  %411 = vst [vmem:[%s384_s23 + $0x28] sm:$0xff] %v410_v5  ;;  %v412_v6 = vld [vmem:[%s3097_s22 + $0x60] sm:$0xff]  ;;  %v414_v7 = vld [vmem:[%s3097_s22 + $0x68] sm:$0xff] }
  0x1f   : > { %v416_v8 = vld [vmem:[%s3097_s22 + $0x80] sm:$0xff]  ;;  %413 = vst [vmem:[%s384_s23 + $0x30] sm:$0xff] %v412_v6  ;;  %415 = vst [vmem:[%s384_s23 + $0x38] sm:$0xff] %v414_v7  ;;  %v418_v9 = vld [vmem:[%s3097_s22 + $0x88] sm:$0xff] }
  0x20   : > { %417 = vst [vmem:[%s384_s23 + $0x40] sm:$0xff] %v416_v8  ;;  %v420_v10 = vld [vmem:[%s3097_s22 + $0xa0] sm:$0xff]  ;;  %v422_v11 = vld [vmem:[%s3097_s22 + $0xa8] sm:$0xff]  ;;  %419 = vst [vmem:[%s384_s23 + $0x48] sm:$0xff] %v418_v9 }
  0x21   : > { %421 = vst [vmem:[%s384_s23 + $0x50] sm:$0xff] %v420_v10  ;;  %423 = vst [vmem:[%s384_s23 + $0x58] sm:$0xff] %v422_v11  ;;  %v424_v12 = vld [vmem:[%s3097_s22 + $0xc0] sm:$0xff]  ;;  %v426_v13 = vld [vmem:[%s3097_s22 + $0xc8] sm:$0xff] }
  0x22   : > { %v428_v14 = vld [vmem:[%s3097_s22 + $0xe0] sm:$0xff]  ;;  %425 = vst [vmem:[%s384_s23 + $0x60] sm:$0xff] %v424_v12  ;;  %427 = vst [vmem:[%s384_s23 + $0x68] sm:$0xff] %v426_v13  ;;  %v430_v15 = vld [vmem:[%s3097_s22 + $0xe8] sm:$0xff] }
  0x23   : > { %429 = vst [vmem:[%s384_s23 + $0x70] sm:$0xff] %v428_v14  ;;  %431 = vst [vmem:[%s384_s23 + $0x78] sm:$0xff] %v430_v15 }
  0x24 PF: > { %p2801_p7 = scmp.ge.s32.totalorder %s2975_s27, 1  ;;  %p436_p8 = scmp.lt.s32.totalorder %s2975_s27, 3 }
  0x26   : > { %p437_p9 = pnand %p2801_p7, %p436_p8 }
  0x27   : > { %s443_s24 = sand.u32 (!%p437_p9), 1, %s2967_s25   ;;  %s4160_s1 = sld [smem:[#allocation7_spill]] (!%p437_p9) }
  0x28   : > { %440 = sbr.rel (%p437_p9) target bundleno = 1431 (0x597), region = 91  ;;  %s3118_s30 = sshll.u32 (!%p437_p9), %s443_s24, 7 }
  0x29   : > { %s3130_s25 = scalar_lea.vmem (!%p437_p9), [#allocation4], %s3118_s30  ;;  %s4140_s18 = smov (!%p437_p9), 112  }
  0x2a   : > { %s4142_s19 = smov (!%p437_p9), 113   ;;  %s4144_s20 = smov (!%p437_p9), 127  }
  0x2b   : > { %s4146_s21 = smov (!%p437_p9), 1   ;;  %s4148_s22 = smov (!%p437_p9), 15  }
  0x2c   : > { %s4150_s23 = smov (!%p437_p9), 16   ;;  %s4152_s24 = smov (!%p437_p9), 17  }
  0x2d   : > { %v2977_v16 = vmov 0   ;;  %v514_v17 = vld [vmem:[%s4127_s2] sm:$0xff]  ;;  %v515_v18 = vld [vmem:[%s4127_s2 + $0x8] sm:$0xff]  ;;  %v505_v20 = vld [vmem:[%s3130_s25 + $0x78] sm:$0xff]  ;;  %vm531_vm0 = vcmask 523264   ;;  %vm641_vm1 = vcmask 130048  }
  0x2e   : > { %567 = vmatprep.mubr.bf16.mxu0 %v2977_v16  ;;  %2903 = vset.pattern.permute.xlu0 %v2977_v16  ;;  %v503_v19 = vld [vmem:[%s3130_s25 + $0x68] sm:$0xff]  ;;  %v502_v21 = vld [vmem:[%s3130_s25 + $0x60] sm:$0xff]  ;;  %v504_v23 = vld [vmem:[%s3130_s25 + $0x70] sm:$0xff]  ;;  %s4165_s0 = smov 113   ;;  %s4166_s17 = smov 112   ;;  %vm1375_vm10 = vcmask 64512  }
  0x2f   : > { %518 = vperm.xlu0 %2903, %v514_v17   ;;  %683 = vmatprep.mubr.bf16.mxu1 %v2977_v16  ;;  %v513_v22 = vpack.c.bf16 %v505_v20, %v503_v19  ;;  %v499_v24 = vld [vmem:[%s3130_s25 + $0x48] sm:$0xff]  ;;  %v501_v25 = vld [vmem:[%s3130_s25 + $0x58] sm:$0xff]  ;;  %v512_v26 = vpack.c.bf16 %v504_v23, %v502_v21  ;;  %v498_v28 = vld [vmem:[%s3130_s25 + $0x40] sm:$0xff]  ;;  %s4168_s28 = smov 17  }
  0x30   : > { %2904 = vset.pattern.permute.xlu1 %v2977_v16  ;;  %v511_v27 = vpack.c.bf16 %v501_v25, %v499_v24  ;;  %v500_v29 = vld [vmem:[%s3130_s25 + $0x50] sm:$0xff]  ;;  %v495_v30 = vld [vmem:[%s3130_s25 + $0x28] sm:$0xff]  ;;  %v497_v31 = vld [vmem:[%s3130_s25 + $0x38] sm:$0xff] }
  0x31   : > { %543 = vmatprep.subr.bf16.mxu0 %v513_v22  ;;  %v591_v32 = vld [vmem:[%s4129_s4 + $0x8] sm:$0xff]  ;;  %v510_v33 = vpack.c.bf16 %v500_v29, %v498_v28  ;;  %v494_v34 = vld [vmem:[%s3130_s25 + $0x20] sm:$0xff]  ;;  %v496_v35 = vld [vmem:[%s3130_s25 + $0x30] sm:$0xff]  ;;  %v509_v37 = vpack.c.bf16 %v497_v31, %v495_v30 }
  0x32   : > { %544 = vmatpush1.bf16.msra.mxu0 %v512_v26  ;;  %v491_v36 = vld [vmem:[%s3130_s25 + $0x8] sm:$0xff]  ;;  %v493_v38 = vld [vmem:[%s3130_s25 + $0x18] sm:$0xff]  ;;  %v508_v39 = vpack.c.bf16 %v496_v35, %v494_v34  ;;  %v490_v41 = vld [vmem:[%s3130_s25] sm:$0xff] }
  0x33   : > { %523 = vperm.xlu0 %2903, %v515_v18   ;;  %545 = vmatprep.subr.bf16.mxu0 %v511_v27  ;;  %v507_v40 = vpack.c.bf16 %v493_v38, %v491_v36  ;;  %v492_v42 = vld [vmem:[%s3130_s25 + $0x10] sm:$0xff]  ;;  %v2905_v44 = vld [vmem:[%s4160_s1] sm:$0xff]   ;;  %v593_v45 = vld [vmem:[%s4129_s4 + $0x18] sm:$0xff] }
  0x34   : > { %v506_v43 = vpack.c.bf16 %v492_v42, %v490_v41  ;;  %613 = vperm.xlu1 %2904, %v593_v45   ;;  %v592_v46 = vld [vmem:[%s4129_s4 + $0x10] sm:$0xff]  ;;  %v590_v47 = vld [vmem:[%s4129_s4] sm:$0xff]  ;;  %v2907_v1 = vld [vmem:[%s4128_s3 + $0x8] sm:$0xff]  }
  0x35   : > { %v2906_v0 = vld [vmem:[%s4128_s3] sm:$0xff]   ;;  %v2908_v2 = vld [vmem:[%s4128_s3 + $0x10] sm:$0xff]   ;;  %v1137_v35 = vld [vmem:[%s4130_s5 + $0x8] sm:$0xff] }
  0x36   : > { %546 = vmatpush1.bf16.msra.mxu0 %v510_v33  ;;  %v2985_v33 = vmov 0.0   ;;  %v1136_v34 = vld [vmem:[%s4130_s5] sm:$0xff]  ;;  %v1138_v38 = vld [vmem:[%s4130_s5 + $0x10] sm:$0xff]  ;;  %v1139_v41 = vld [vmem:[%s4130_s5 + $0x18] sm:$0xff] }
  0x37   : > { %603 = vperm.xlu0 %2903, %v591_v32   ;;  %547 = vmatprep.subr.bf16.mxu0 %v509_v37  ;;  %v919_v32 = vld [vmem:[%s4131_s6 + $0x8] sm:$0xff]  ;;  %v594_v36 = vld [vmem:[%s4129_s4 + $0x20] sm:$0xff] }
  0x38   : > { %608 = vperm.xlu1 %2904, %v592_v46   ;;  %v595_v37 = vld [vmem:[%s4129_s4 + $0x28] sm:$0xff]  ;;  %v1140_v42 = vld [vmem:[%s4130_s5 + $0x20] sm:$0xff] }
  0x3a   : > { %548 = vmatpush1.bf16.msra.mxu0 %v508_v39  ;;  %v2418_v39 = vld [vmem:[%s4134_s9] sm:$0xff] }
  0x3b   : > { %549 = vmatprep.subr.bf16.mxu0 %v507_v40  ;;  %v2419_v40 = vld [vmem:[%s4134_s9 + $0x8] sm:$0xff] }
  0x3c   : > { %598 = vperm.xlu1 %2904, %v590_v47  }
  0x3e   : > { %550 = vmatpush1.bf16.msra.mxu0 %v506_v43 }
  0x41   : > { %2805 = vmatmul.mubr.msk.bf16.vlgmr.msra.gmra.mxu0 %vm531_vm0, %v2905_v44 }
  0x42   : > { %1236 = vmatprep.mubr.f32.mxu0 %v2985_v33 }
  0xaa   : > { %v519_v48 = vpop.permute.xlu0 %518 }
  0xae   : > { %v524_v51 = vpop.permute.xlu0 %523 }
  0xaf   : > { %v614_v3 = vpop.permute.xlu1 %613 }
  0xb2   : > { %v604_v8 = vpop.permute.xlu0 %603 }
  0xb3   : > { %v609_v4 = vpop.permute.xlu1 %608 }
  0xb7   : > { %v599_v9 = vpop.permute.xlu1 %598 }
 0x101   : > { %v569_v49 = vpop.f32.mrf.mxu0 }
 0x102   : > { %v570_v55 = vadd.f32 %v569_v49, %v519_v48 }
 0x103   : > { %v571_v50 = vpop.f32.mrf.mxu0 }
 0x104   : > { %v572_v53 = vadd.f32 %v571_v50, %v519_v48  ;;  %v578_v61 = vmax.f32 %v570_v55, 0.0 }
 0x105   : > { %v573_v52 = vpop.f32.mrf.mxu0 }
 0x106   : > { %v574_v54 = vadd.f32 %v573_v52, %v524_v51  ;;  %v579_v59 = vmax.f32 %v572_v53, 0.0 }
 0x107   : > { %v575_v56 = vpop.f32.mrf.mxu0 }
 0x108   : > { %v576_v57 = vadd.f32 %v575_v56, %v524_v51  ;;  %v580_v58 = vmax.f32 %v574_v54, 0.0  ;;  %v730_v51 = vlaneseq }
 0x10a   : > { %v581_v60 = vmax.f32 %v576_v57, 0.0  ;;  %v588_v63 = vpack.c.bf16 %v580_v58, %v578_v61  ;;  %v3312_v54 = vand.u32 127, %v730_v51 }
 0x10c   : > { %v589_v62 = vpack.c.bf16 %v581_v60, %v579_v59  ;;  %vm866_vm2 = vcmp.lt.s32.totalorder %v3312_v54, 112  ;;  %vm845_vm3 = vcmp.lt.s32.totalorder %v3312_v54, 113  ;;  %vm824_vm4 = vcmp.lt.s32.totalorder %v3312_v54, 127 }
 0x10d   : > { %vm795_vm5 = vcmp.lt.s32.totalorder %v3312_v54, 1  ;;  %vm774_vm6 = vcmp.lt.s32.totalorder %v3312_v54, 15  ;;  %vm753_vm7 = vcmp.lt.s32.totalorder %v3312_v54, 16  ;;  %vm732_vm8 = vcmp.lt.s32.totalorder %v3312_v54, 17 }
 0x10e   : > { %665 = vmatprep.subr.bf16.mxu1 %v589_v62  ;;  %vm887_vm9 = vcmp.lt.s32.totalorder %v3312_v54, 111 }
 0x10f   : > { %666 = vmatpush1.bf16.msra.mxu1 %v588_v63 }
 0x112   : > { %2809 = vmatmul.mubr.msk.bf16.vlgmr.msra.gmra.mxu1 %vm641_vm1, %v2906_v0 }
 0x113   : > { %693 = vmatprep.mubr.bf16.mxu1 %v2977_v16 }
 0x11a   : > { %2810 = vmatmul.mubr.msk.bf16.gmra.mxu1 %vm641_vm1, %v2907_v1 }
 0x11b   : > { %703 = vmatprep.mubr.bf16.mxu1 %v2977_v16 }
 0x122   : > { %2811 = vmatmul.mubr.msk.bf16.gmra.mxu1 %vm641_vm1, %v2908_v2 }
 0x123   : > { %2812 = vmatprep.mubr.msk.f32.mxu1 %vm641_vm1, %v919_v32 }
 0x1d2   : > { %v685_v5 = vpop.f32.mrf.mxu1 }
 0x1d3   : > { %v686_v14 = vadd.f32 %v685_v5, %v599_v9 }
 0x1d4   : > { %v687_v6 = vpop.f32.mrf.mxu1 }
 0x1d5   : > { %v688_v12 = vadd.f32 %v687_v6, %v599_v9  ;;  %v3187_v24 = vmax.f32 %v686_v14, 0.0 }
 0x1d6   : > { %v689_v7 = vpop.f32.mrf.mxu1 }
 0x1d7   : > { %v690_v10 = vadd.f32 %v689_v7, %v604_v8  ;;  %v3182_v21 = vmax.f32 %v688_v12, 0.0 }
 0x1d8   : > { %v691_v11 = vpop.f32.mrf.mxu1 }
 0x1d9   : > { %v692_v13 = vadd.f32 %v691_v11, %v604_v8  ;;  %v3180_v19 = vmax.f32 %v690_v10, 0.0 }
 0x1da   : > { %v695_v15 = vpop.f32.mrf.mxu1 }
 0x1db   : > { %v3178_v17 = vmax.f32 %v692_v13, 0.0  ;;  %v696_v18 = vadd.f32 %v695_v15, %v609_v4 }
 0x1dc   : > { %v697_v20 = vpop.f32.mrf.mxu1 }
 0x1dd   : > { %v3184_v22 = vmax.f32 %v696_v18, 0.0  ;;  %v698_v23 = vadd.f32 %v697_v20, %v609_v4  ;;  %1200 = vmatprep.subr.mxu0 %v3178_v17 }
 0x1de   : > { %1201 = vmatpush1.msra.mxu0 %v3180_v19  ;;  %v699_v26 = vpop.f32.mrf.mxu1 }
 0x1df   : > { %v3190_v25 = vmax.f32 %v698_v23, 0.0  ;;  %858 = vrot.lane.b32.xlu0 %v3184_v22, %s4140_s18  ;;  %1202 = vmatprep.subr.mxu0 %v3182_v21  ;;  %v700_v28 = vadd.f32 %v699_v26, %v614_v3 }
 0x1e0   : > { %1203 = vmatpush1.msra.mxu0 %v3187_v24  ;;  %v701_v27 = vpop.f32.mrf.mxu1 }
 0x1e1   : > { %862 = vrot.lane.b32.xlu1 %v3190_v25, %s4140_s18  ;;  %v702_v29 = vadd.f32 %v701_v27, %v614_v3  ;;  %v3216_v30 = vmax.f32 %v700_v28, 0.0  ;;  %2821 = vmatmul.mubr.msk.f32.vlgmr.msra.gmra.mxu0 %vm641_vm1, %v1136_v34 }
 0x1e2   : > { %1242 = vmatprep.mubr.f32.mxu0 %v2985_v33 }
 0x1e3   : > { %837 = vrot.lane.b32.xlu0 %v3184_v22, %s4142_s19  ;;  %v3220_v31 = vmax.f32 %v702_v29, 0.0 }
 0x1e5   : > { %841 = vrot.lane.b32.xlu1 %v3190_v25, %s4142_s19  ;;  %2822 = vmatmul.mubr.msk.f32.gmra.mxu0 %vm641_vm1, %v1137_v35 }
 0x1e6   : > { %1248 = vmatprep.mubr.f32.mxu0 %v2985_v33 }
 0x1e7   : > { %816 = vrot.lane.b32.xlu0 %v3184_v22, %s4144_s20 }
 0x1e9   : > { %820 = vrot.lane.b32.xlu1 %v3190_v25, %s4144_s20  ;;  %2823 = vmatmul.mubr.msk.f32.gmra.mxu0 %vm641_vm1, %v1138_v38 }
 0x1ea   : > { %1254 = vmatprep.mubr.f32.mxu0 %v2985_v33 }
 0x1eb   : > { %787 = vrot.lane.b32.xlu0 %v3184_v22, %s4146_s21 }
 0x1ed   : > { %791 = vrot.lane.b32.xlu1 %v3190_v25, %s4146_s21  ;;  %2824 = vmatmul.mubr.msk.f32.gmra.mxu0 %vm641_vm1, %v1139_v41 }
 0x1ee   : > { %1260 = vmatprep.mubr.f32.mxu0 %v2985_v33 }
 0x1ef   : > { %766 = vrot.lane.b32.xlu0 %v3184_v22, %s4148_s22 }
 0x1f1   : > { %770 = vrot.lane.b32.xlu1 %v3190_v25, %s4148_s22  ;;  %2825 = vmatmul.mubr.msk.f32.gmra.mxu0 %vm641_vm1, %v1140_v42 }
 0x1f2   : > { %1446 = vmatprep.mubr.f32.mxu0 %v2985_v33 }
 0x1f3   : > { %745 = vrot.lane.b32.xlu0 %v3184_v22, %s4150_s23 }
 0x1f5   : > { %749 = vrot.lane.b32.xlu1 %v3190_v25, %s4150_s23 }
 0x1f7   : > { %860 = vrot.lane.b32.xlu0 %v3216_v30, %s4140_s18 }
 0x1f9   : > { %864 = vrot.lane.b32.xlu1 %v3220_v31, %s4140_s18  ;;  %s4062_s18 = scalar_lea.vmem [#allocation5], %s3118_s30  ;;  %s4169_s30 = sadd.s32 (%p3087_p5), 4294967295, %s2975_s27  }
 0x1fb   : > { %839 = vrot.lane.b32.xlu0 %v3216_v30, %s4142_s19 }
 0x1fd   : > { %843 = vrot.lane.b32.xlu1 %v3220_v31, %s4142_s19  ;;  %s4154_s19 = smov 111  }
 0x1ff   : > { %818 = vrot.lane.b32.xlu0 %v3216_v30, %s4144_s20 }
 0x201   : > { %822 = vrot.lane.b32.xlu1 %v3220_v31, %s4144_s20  ;;  %s4167_s20 = smov 111  }
 0x203   : > { %722 = vrot.lane.b32.xlu0 %v3184_v22, %s4152_s24 }
 0x205   : > { %726 = vrot.lane.b32.xlu1 %v3190_v25, %s4152_s24 }
 0x207   : > { %789 = vrot.lane.b32.xlu0 %v3216_v30, %s4146_s21 }
 0x209   : > { %793 = vrot.lane.b32.xlu1 %v3220_v31, %s4146_s21  ;;  %s4162_s21 = smov 15  }
 0x20b   : > { %768 = vrot.lane.b32.xlu0 %v3216_v30, %s4148_s22 }
 0x20d   : > { %772 = vrot.lane.b32.xlu1 %v3220_v31, %s4148_s22 }
 0x20f   : > { %747 = vrot.lane.b32.xlu0 %v3216_v30, %s4150_s23 }
 0x211   : > { %751 = vrot.lane.b32.xlu1 %v3220_v31, %s4150_s23  ;;  %s4161_s23 = smov 16  }
 0x213   : > { %724 = vrot.lane.b32.xlu0 %v3216_v30, %s4152_s24 }
 0x215   : > { %728 = vrot.lane.b32.xlu1 %v3220_v31, %s4152_s24 }
 0x217   : > { %881 = vrot.lane.b32.xlu0 %v3216_v30, %s4154_s19 }
 0x219   : > { %885 = vrot.lane.b32.xlu1 %v3220_v31, %s4154_s19 }
 0x21b   : > { %879 = vrot.lane.b32.xlu0 %v3184_v22, %s4154_s19 }
 0x21d   : > { %883 = vrot.lane.b32.xlu1 %v3190_v25, %s4154_s19  ;;  %s4164_s19 = smov 127  }
 0x21f   : > { %618 = vperm.xlu0 %2903, %v594_v36   ;;  %v811_v36 = vmul.f32 %v3220_v31, %v3178_v17 }
 0x221   : > { %623 = vperm.xlu1 %2904, %v595_v37   ;;  %v810_v37 = vmul.f32 %v3216_v30, %v3180_v19  ;;  %v808_v30 = vmul.f32 %v3184_v22, %v3187_v24 }
 0x223   : > { %2422 = vperm.xlu0 %2903, %v2418_v39   ;;  %v809_v39 = vmul.f32 %v3190_v25, %v3182_v21 }
 0x225   : > { %2427 = vperm.xlu1 %2904, %v2419_v40  }
 0x251   : > { %v859_v43 = vpop.permute.xlu0 %858 }
 0x253   : > { %v863_v44 = vpop.permute.xlu1 %862 }
 0x254   : > { %v869_v59 = vsel %vm866_vm2, %v863_v44, %v859_v43  ;;  %v867_v62 = vsel %vm866_vm2, %v859_v43, %v863_v44 }
 0x255   : > { %v838_v45 = vpop.permute.xlu0 %837  ;;  %v872_v2 = vmul.f32 %v869_v59, %v3182_v21  ;;  %v871_v4 = vmul.f32 %v867_v62, %v3187_v24 }
 0x257   : > { %v842_v46 = vpop.permute.xlu1 %841 }
 0x258   : > { %v848_v5 = vsel %vm845_vm3, %v842_v46, %v838_v45  ;;  %v846_v8 = vsel %vm845_vm3, %v838_v45, %v842_v46 }
 0x259   : > { %v817_v47 = vpop.permute.xlu0 %816  ;;  %v851_v12 = vmul.f32 %v848_v5, %v3182_v21  ;;  %v850_v14 = vmul.f32 %v846_v8, %v3187_v24 }
 0x25b   : > { %v821_v48 = vpop.permute.xlu1 %820 }
 0x25c   : > { %v827_v15 = vsel %vm824_vm4, %v821_v48, %v817_v47  ;;  %v825_v23 = vsel %vm824_vm4, %v817_v47, %v821_v48 }
 0x25d   : > { %v3304_v49 = vpop.permute.xlu0 %787  ;;  %v830_v29 = vmul.f32 %v827_v15, %v3182_v21  ;;  %v829_v34 = vmul.f32 %v825_v23, %v3187_v24 }
 0x25f   : > { %v3306_v50 = vpop.permute.xlu1 %791 }
 0x260   : > { %v796_v40 = vsel %vm795_vm5, %v3304_v49, %v3306_v50  ;;  %v798_v25 = vsel %vm795_vm5, %v3306_v50, %v3304_v49 }
 0x261   : > { %v3308_v52 = vpop.permute.xlu0 %766  ;;  %v801_v45 = vmul.f32 %v796_v40, %v3182_v21  ;;  %v800_v22 = vmul.f32 %v798_v25, %v3187_v24  ;;  %v927_v25 = vld [vmem:[%s4131_s6 + $0x48] sm:$0xff] }
 0x263   : > { %v3310_v53 = vpop.permute.xlu1 %770 }
 0x264   : > { %v775_v47 = vsel %vm774_vm6, %v3308_v52, %v3310_v53  ;;  %v777_v50 = vsel %vm774_vm6, %v3310_v53, %v3308_v52 }
 0x265   : > { %v3314_v55 = vpop.permute.xlu0 %745  ;;  %v780_v59 = vmul.f32 %v775_v47, %v3182_v21  ;;  %v932_v47 = vld [vmem:[%s4131_s6 + $0x70] sm:$0xff] }
 0x267   : > { %v3316_v56 = vpop.permute.xlu1 %749 }
 0x268   : > { %v754_v52 = vsel %vm753_vm7, %v3314_v55, %v3316_v56 }
 0x269   : > { %v861_v57 = vpop.permute.xlu0 %860 }
 0x26b   : > { %v865_v58 = vpop.permute.xlu1 %864 }
 0x26c   : > { %v868_v60 = vsel %vm866_vm2, %v861_v57, %v865_v58  ;;  %v870_v61 = vsel %vm866_vm2, %v865_v58, %v861_v57 }
 0x26d   : > { %v873_v63 = vmul.f32 %v868_v60, %v3180_v19  ;;  %v874_v0 = vmul.f32 %v870_v61, %v3178_v17  ;;  %v840_v1 = vpop.permute.xlu0 %839  ;;  %v779_v61 = vmul.f32 %v777_v50, %v3187_v24  ;;  %v1141_v50 = vld [vmem:[%s4130_s5 + $0x28] sm:$0xff] }
 0x26f   : > { %v844_v3 = vpop.permute.xlu1 %843  ;;  %999 = vmatprep.subr.mxu1 %v874_v0 }
 0x270   : > { %v847_v6 = vsel %vm845_vm3, %v840_v1, %v844_v3  ;;  %v849_v7 = vsel %vm845_vm3, %v844_v3, %v840_v1  ;;  %1000 = vmatpush1.msra.mxu1 %v873_v63  ;;  %v756_v63 = vsel %vm753_vm7, %v3316_v56, %v3314_v55  ;;  %v759_v3 = vmul.f32 %v754_v52, %v3182_v21  ;;  %v2434_v52 = vld [vmem:[%s4135_s10] sm:$0xff] }
 0x271   : > { %v852_v9 = vmul.f32 %v847_v6, %v3180_v19  ;;  %v853_v10 = vmul.f32 %v849_v7, %v3178_v17  ;;  %v819_v11 = vpop.permute.xlu0 %818  ;;  %1001 = vmatprep.subr.mxu1 %v872_v2  ;;  %v758_v5 = vmul.f32 %v756_v63, %v3187_v24  ;;  %v2465_v63 = vld [vmem:[%s4137_s12 + $0x8] sm:$0xff] }
 0x272   : > { %1002 = vmatpush1.msra.mxu1 %v871_v4 }
 0x273   : > { %v823_v13 = vpop.permute.xlu1 %822  ;;  %1003 = vmatprep.subr.mxu1 %v853_v10 }
 0x274   : > { %v826_v18 = vsel %vm824_vm4, %v819_v11, %v823_v13  ;;  %v828_v20 = vsel %vm824_vm4, %v823_v13, %v819_v11  ;;  %1004 = vmatpush1.msra.mxu1 %v852_v9 }
 0x275   : > { %v831_v26 = vmul.f32 %v826_v18, %v3180_v19  ;;  %v832_v27 = vmul.f32 %v828_v20, %v3178_v17  ;;  %v3355_v28 = vpop.permute.xlu0 %722  ;;  %1005 = vmatprep.subr.mxu1 %v851_v12 }
 0x276   : > { %1006 = vmatpush1.msra.mxu1 %v850_v14 }
 0x277   : > { %v3358_v32 = vpop.permute.xlu1 %726  ;;  %1007 = vmatprep.subr.mxu1 %v832_v27 }
 0x278   : > { %1008 = vmatpush1.msra.mxu1 %v831_v26  ;;  %v733_v55 = vsel %vm732_vm8, %v3355_v28, %v3358_v32  ;;  %v735_v7 = vsel %vm732_vm8, %v3358_v32, %v3355_v28 }
 0x279   : > { %v790_v35 = vpop.permute.xlu0 %789  ;;  %1009 = vmatprep.subr.mxu1 %v830_v29  ;;  %v738_v11 = vmul.f32 %v733_v55, %v3182_v21  ;;  %v737_v13 = vmul.f32 %v735_v7, %v3187_v24 }
 0x27a   : > { %1010 = vmatpush1.msra.mxu1 %v829_v34  ;;  %v918_v34 = vld [vmem:[%s4131_s6] sm:$0xff] }
 0x27b   : > { %v794_v38 = vpop.permute.xlu1 %793  ;;  %1011 = vmatprep.subr.mxu1 %v811_v36  ;;  %v705_v36 = vpop.f32.mrf.mxu1 }
 0x27c   : > { %v797_v41 = vsel %vm795_vm5, %v790_v35, %v794_v38  ;;  %v799_v31 = vsel %vm795_vm5, %v794_v38, %v790_v35  ;;  %1012 = vmatpush1.msra.mxu1 %v810_v37  ;;  %v921_v35 = vld [vmem:[%s4131_s6 + $0x18] sm:$0xff]  ;;  %v920_v37 = vld [vmem:[%s4131_s6 + $0x10] sm:$0xff]  ;;  %v923_v38 = vld [vmem:[%s4131_s6 + $0x28] sm:$0xff] }
 0x27d   : > { %v802_v42 = vmul.f32 %v799_v31, %v3180_v19  ;;  %v803_v43 = vmul.f32 %v797_v41, %v3178_v17  ;;  %v769_v44 = vpop.permute.xlu0 %768  ;;  %1013 = vmatprep.subr.mxu1 %v809_v39  ;;  %v707_v39 = vpop.f32.mrf.mxu1 }
 0x27e   : > { %1014 = vmatpush1.msra.mxu1 %v808_v30 }
 0x27f   : > { %v773_v46 = vpop.permute.xlu1 %772  ;;  %1015 = vmatprep.subr.mxu1 %v803_v43  ;;  %v709_v41 = vpop.f32.mrf.mxu1  ;;  %v929_v43 = vld [vmem:[%s4131_s6 + $0x58] sm:$0xff] }
 0x280   : > { %v776_v48 = vsel %vm774_vm6, %v769_v44, %v773_v46  ;;  %v778_v49 = vsel %vm774_vm6, %v773_v46, %v769_v44  ;;  %1016 = vmatpush1.msra.mxu1 %v802_v42  ;;  %v926_v42 = vld [vmem:[%s4131_s6 + $0x40] sm:$0xff]  ;;  %v928_v44 = vld [vmem:[%s4131_s6 + $0x50] sm:$0xff] }
 0x281   : > { %v781_v51 = vmul.f32 %v778_v49, %v3180_v19  ;;  %v782_v57 = vmul.f32 %v776_v48, %v3178_v17  ;;  %v748_v58 = vpop.permute.xlu0 %747  ;;  %1017 = vmatprep.subr.mxu1 %v801_v45  ;;  %v931_v45 = vld [vmem:[%s4131_s6 + $0x68] sm:$0xff]  ;;  %v930_v46 = vld [vmem:[%s4131_s6 + $0x60] sm:$0xff] }
 0x282   : > { %1018 = vmatpush1.msra.mxu1 %v800_v22  ;;  %v933_v22 = vld [vmem:[%s4131_s6 + $0x78] sm:$0xff]  ;;  %v935_v48 = vld [vmem:[%s4131_s6 + $0x88] sm:$0xff]  ;;  %v934_v49 = vld [vmem:[%s4131_s6 + $0x80] sm:$0xff] }
 0x283   : > { %v752_v60 = vpop.permute.xlu1 %751  ;;  %1019 = vmatprep.subr.mxu1 %v782_v57  ;;  %v1142_v57 = vld [vmem:[%s4130_s5 + $0x30] sm:$0xff] }
 0x284   : > { %v755_v53 = vsel %vm753_vm7, %v748_v58, %v752_v60  ;;  %v757_v62 = vsel %vm753_vm7, %v752_v60, %v748_v58  ;;  %1020 = vmatpush1.msra.mxu1 %v781_v51  ;;  %v711_v51 = vpop.f32.mrf.mxu1  ;;  %v1143_v60 = vld [vmem:[%s4130_s5 + $0x38] sm:$0xff] }
 0x285   : > { %v760_v0 = vmul.f32 %v757_v62, %v3180_v19  ;;  %v761_v1 = vmul.f32 %v755_v53, %v3178_v17  ;;  %v725_v2 = vpop.permute.xlu0 %724  ;;  %1021 = vmatprep.subr.mxu1 %v780_v59  ;;  %v2435_v53 = vld [vmem:[%s4135_s10 + $0x8] sm:$0xff]  ;;  %v2464_v62 = vld [vmem:[%s4137_s12] sm:$0xff] }
 0x286   : > { %1022 = vmatpush1.msra.mxu1 %v779_v61  ;;  %v1144_v61 = vld [vmem:[%s4130_s5 + $0x40] sm:$0xff] }
 0x287   : > { %v729_v4 = vpop.permute.xlu1 %728  ;;  %1023 = vmatprep.subr.mxu1 %v761_v1  ;;  %v2467_v1 = vld [vmem:[%s4137_s12 + $0x18] sm:$0xff] }
 0x288   : > { %v734_v56 = vsel %vm732_vm8, %v725_v2, %v729_v4  ;;  %v736_v6 = vsel %vm732_vm8, %v729_v4, %v725_v2  ;;  %1024 = vmatpush1.msra.mxu1 %v760_v0  ;;  %v2466_v0 = vld [vmem:[%s4137_s12 + $0x10] sm:$0xff]  ;;  %v2468_v2 = vld [vmem:[%s4137_s12 + $0x20] sm:$0xff] }
 0x289   : > { %v739_v8 = vmul.f32 %v736_v6, %v3180_v19  ;;  %v740_v9 = vmul.f32 %v734_v56, %v3178_v17  ;;  %v882_v10 = vpop.permute.xlu0 %881  ;;  %1025 = vmatprep.subr.mxu1 %v759_v3  ;;  %v2469_v3 = vld [vmem:[%s4137_s12 + $0x28] sm:$0xff]  ;;  %v2470_v4 = vld [vmem:[%s4137_s12 + $0x30] sm:$0xff] }
 0x28a   : > { %1026 = vmatpush1.msra.mxu1 %v758_v5  ;;  %v2471_v5 = vld [vmem:[%s4137_s12 + $0x38] sm:$0xff] }
 0x28b   : > { %v886_v12 = vpop.permute.xlu1 %885  ;;  %1027 = vmatprep.subr.mxu1 %v740_v9 }
 0x28c   : > { %v889_v14 = vsel %vm887_vm9, %v882_v10, %v886_v12  ;;  %v891_v15 = vsel %vm887_vm9, %v886_v12, %v882_v10  ;;  %1028 = vmatpush1.msra.mxu1 %v739_v8 }
 0x28d   : > { %v894_v18 = vmul.f32 %v889_v14, %v3180_v19  ;;  %v895_v20 = vmul.f32 %v891_v15, %v3178_v17  ;;  %1029 = vmatprep.subr.mxu1 %v738_v11  ;;  %v880_v23 = vpop.permute.xlu0 %879 }
 0x28e   : > { %1030 = vmatpush1.msra.mxu1 %v737_v13 }
 0x28f   : > { %v884_v26 = vpop.permute.xlu1 %883  ;;  %1059 = vmatprep.subr.mxu1 %v895_v20 }
 0x290   : > { %v888_v27 = vsel %vm887_vm9, %v880_v23, %v884_v26  ;;  %v890_v28 = vsel %vm887_vm9, %v884_v26, %v880_v23  ;;  %1060 = vmatpush2.msra.mxu1 %v894_v18 }
 0x291   : > { %v892_v29 = vmul.f32 %v888_v27, %v3187_v24  ;;  %v893_v32 = vmul.f32 %v890_v28, %v3182_v21 }
 0x293   : > { %1061 = vmatprep.subr.mxu1 %v893_v32  ;;  %v3639_v32 = vld [vmem:[%s4133_s8 + $0x10] sm:$0xff] }
 0x294   : > { %1062 = vmatpush2.msra.mxu1 %v892_v29 }
 0x295   : > { %1064 = vmatmul.mubr.f32.vlgmr.msra.gmra.mxu1 %v918_v34  ;;  %2865 = vmatprep.subr.mxu1 %v3178_v17  ;;  %v922_v17 = vld [vmem:[%s4131_s6 + $0x20] sm:$0xff] }
 0x296   : > { %2867 = vmatpush1.msra.mxu1 %v3180_v19  ;;  %2813 = vmatprep.mubr.msk.f32.mxu1 %vm641_vm1, %v921_v35  ;;  %v3646_v35 = vld [vmem:[%s4133_s8] sm:$0xff] }
 0x297   : > { %2866 = vmatprep.subr.mxu1 %v3182_v21  ;;  %v925_v21 = vld [vmem:[%s4131_s6 + $0x38] sm:$0xff] }
 0x298   : > { %2868 = vmatpush1.msra.mxu1 %v3187_v24  ;;  %v924_v24 = vld [vmem:[%s4131_s6 + $0x30] sm:$0xff] }
 0x299   : > { %1070 = vmatmul.mubr.f32.gmra.mxu1 %v920_v37 }
 0x29a   : > { %v619_v40 = vpop.permute.xlu0 %618  ;;  %2814 = vmatprep.mubr.msk.f32.mxu1 %vm641_vm1, %v923_v38 }
 0x29b   : > { %v3471_v19 = vadd.f32 %v705_v36, %v619_v40  ;;  %v3556_v58 = vadd.f32 %v707_v39, %v619_v40  ;;  %v3651_v36 = vld [vmem:[%s4133_s8 + $0x20] sm:$0xff]  ;;  %v3657_v40 = vld [vmem:[%s4133_s8 + $0x30] sm:$0xff] }
 0x29c   : > { %v624_v31 = vpop.permute.xlu1 %623 }
 0x29d   : > { %v3476_v30 = vadd.f32 %v709_v41, %v624_v31  ;;  %1459 = vrot.lane.b32.xlu0 %v3471_v19, %s4152_s24  ;;  %1076 = vmatmul.mubr.f32.gmra.mxu1 %v922_v17  ;;  %v3560_v59 = vadd.f32 %v711_v51, %v624_v31  ;;  %v3665_v41 = vld [vmem:[%s4133_s8 + $0x18] sm:$0xff] }
 0x29e   : > { %2815 = vmatprep.mubr.msk.f32.mxu1 %vm641_vm1, %v925_v21 }
 0x29f   : > { %1461 = vrot.lane.b32.xlu1 %v3476_v30, %s4152_s24  ;;  %s4163_s24 = smov 1  }
 0x2a1   : > { %1568 = vrot.lane.b32.xlu0 %v3471_v19, %s4161_s23  ;;  %1082 = vmatmul.mubr.f32.gmra.mxu1 %v924_v24  ;;  %v1238_v6 = vpop.f32.mrf.mxu0  ;;  %v908_v24 = vld [vmem:[%s4133_s8 + $0x40] sm:$0xff] }
 0x2a2   : > { %2816 = vmatprep.mubr.msk.f32.mxu1 %vm641_vm1, %v927_v25 }
 0x2a3   : > { %1570 = vrot.lane.b32.xlu1 %v3476_v30, %s4161_s23  ;;  %v1240_v9 = vpop.f32.mrf.mxu0 }
 0x2a5   : > { %1677 = vrot.lane.b32.xlu0 %v3471_v19, %s4162_s21  ;;  %1088 = vmatmul.mubr.f32.gmra.mxu1 %v926_v42  ;;  %v1244_v12 = vpop.f32.mrf.mxu0 }
 0x2a6   : > { %2817 = vmatprep.mubr.msk.f32.mxu1 %vm641_vm1, %v929_v43  ;;  %v3674_v43 = vld [vmem:[%s4133_s8 + $0x8] sm:$0xff] }
 0x2a7   : > { %1679 = vrot.lane.b32.xlu1 %v3476_v30, %s4162_s21  ;;  %v1246_v15 = vpop.f32.mrf.mxu0 }
 0x2a9   : > { %1786 = vrot.lane.b32.xlu0 %v3471_v19, %s4163_s24  ;;  %1094 = vmatmul.mubr.f32.gmra.mxu1 %v928_v44  ;;  %v1250_v23 = vpop.f32.mrf.mxu0 }
 0x2aa   : > { %2818 = vmatprep.mubr.msk.f32.mxu1 %vm641_vm1, %v931_v45  ;;  %v3681_v45 = vld [vmem:[%s4133_s8 + $0x28] sm:$0xff] }
 0x2ab   : > { %1788 = vrot.lane.b32.xlu1 %v3476_v30, %s4163_s24  ;;  %v1252_v28 = vpop.f32.mrf.mxu0 }
 0x2ad   : > { %1988 = vrot.lane.b32.xlu0 %v3471_v19, %s4164_s19  ;;  %1100 = vmatmul.mubr.f32.gmra.mxu1 %v930_v46  ;;  %v1256_v37 = vpop.f32.mrf.mxu0 }
 0x2ae   : > { %2819 = vmatprep.mubr.msk.f32.mxu1 %vm641_vm1, %v933_v22 }
 0x2af   : > { %1990 = vrot.lane.b32.xlu1 %v3476_v30, %s4164_s19  ;;  %v1258_v25 = vpop.f32.mrf.mxu0 }
 0x2b1   : > { %2097 = vrot.lane.b32.xlu0 %v3471_v19, %s4165_s0  ;;  %1106 = vmatmul.mubr.f32.gmra.mxu1 %v932_v47 }
 0x2b2   : > { %2820 = vmatprep.mubr.msk.f32.mxu1 %vm641_vm1, %v935_v48 }
 0x2b3   : > { %2099 = vrot.lane.b32.xlu1 %v3476_v30, %s4165_s0 }
 0x2b5   : > { %2206 = vrot.lane.b32.xlu0 %v3471_v19, %s4166_s17  ;;  %1112 = vmatmul.mubr.f32.gmra.mxu1 %v934_v49 }
 0x2b6   : > { %1266 = vmatprep.mubr.f32.mxu1 %v2985_v33 }
 0x2b7   : > { %2208 = vrot.lane.b32.xlu1 %v3476_v30, %s4166_s17 }
 0x2b9   : > { %2315 = vrot.lane.b32.xlu0 %v3471_v19, %s4167_s20  ;;  %2826 = vmatmul.mubr.msk.f32.vlgmr.msra.gmra.mxu1 %vm641_vm1, %v1141_v50  ;;  %v3692_v50 = vld [vmem:[%s4133_s8 + $0x38] sm:$0xff] }
 0x2ba   : > { %1272 = vmatprep.mubr.f32.mxu1 %v2985_v33 }
 0x2bb   : > { %2317 = vrot.lane.b32.xlu1 %v3476_v30, %s4167_s20 }
 0x2bd   : > { %1463 = vrot.lane.b32.xlu0 %v3556_v58, %s4168_s28  ;;  %2827 = vmatmul.mubr.msk.f32.gmra.mxu1 %vm641_vm1, %v1142_v57 }
 0x2be   : > { %1278 = vmatprep.mubr.f32.mxu1 %v2985_v33 }
 0x2bf   : > { %1465 = vrot.lane.b32.xlu1 %v3560_v59, %s4168_s28 }
 0x2c1   : > { %1572 = vrot.lane.b32.xlu0 %v3556_v58, %s4161_s23  ;;  %2828 = vmatmul.mubr.msk.f32.gmra.mxu1 %vm641_vm1, %v1143_v60 }
 0x2c2   : > { %1284 = vmatprep.mubr.f32.mxu1 %v2985_v33 }
 0x2c3   : > { %1574 = vrot.lane.b32.xlu1 %v3560_v59, %s4161_s23 }
 0x2c5   : > { %1681 = vrot.lane.b32.xlu0 %v3556_v58, %s4162_s21  ;;  %2829 = vmatmul.mubr.msk.f32.gmra.mxu1 %vm641_vm1, %v1144_v61  ;;  %v1262_v61 = vpop.f32.mrf.mxu0 }
 0x2c6   : > { %1773 = vmatprep.mubr.f32.mxu1 %v2985_v33 }
 0x2c7   : > { %1683 = vrot.lane.b32.xlu1 %v3560_v59, %s4162_s21 }
 0x2c9   : > { %1790 = vrot.lane.b32.xlu0 %v3556_v58, %s4163_s24 }
 0x2cb   : > { %1792 = vrot.lane.b32.xlu1 %v3560_v59, %s4163_s24 }
 0x2cd   : > { %1992 = vrot.lane.b32.xlu0 %v3556_v58, %s4164_s19 }
 0x2cf   : > { %1994 = vrot.lane.b32.xlu1 %v3560_v59, %s4164_s19 }
 0x2d1   : > { %2101 = vrot.lane.b32.xlu0 %v3556_v58, %s4165_s0 }
 0x2d3   : > { %2103 = vrot.lane.b32.xlu1 %v3560_v59, %s4165_s0 }
 0x2d5   : > { %2210 = vrot.lane.b32.xlu0 %v3556_v58, %s4166_s17 }
 0x2d7   : > { %2212 = vrot.lane.b32.xlu1 %v3560_v59, %s4166_s17 }
 0x2d9   : > { %2319 = vrot.lane.b32.xlu0 %v3556_v58, %s4167_s20 }
 0x2db   : > { %2321 = vrot.lane.b32.xlu1 %v3560_v59, %s4167_s20 }
 0x2dd   : > { %2438 = vperm.xlu0 %2903, %v2434_v52   ;;  %v3699_v52 = vld [vmem:[%s4133_s8 + $0x50] sm:$0xff] }
 0x2df   : > { %2443 = vperm.xlu1 %2904, %v2435_v53  }
 0x2e1   : > { %2474 = vperm.xlu0 %2903, %v2464_v62  }
 0x2e3   : > { %2479 = vperm.xlu1 %2904, %v2465_v63  }
 0x2e5   : > { %2484 = vperm.xlu0 %2903, %v2466_v0   ;;  %v909_v0 = vld [vmem:[%s4133_s8 + $0x48] sm:$0xff] }
 0x2e7   : > { %2489 = vperm.xlu1 %2904, %v2467_v1  }
 0x2e9   : > { %2494 = vperm.xlu0 %2903, %v2468_v2  }
 0x2eb   : > { %2499 = vperm.xlu1 %2904, %v2469_v3   ;;  %v3714_v3 = vld [vmem:[%s4133_s8 + $0x60] sm:$0xff] }
 0x2ed   : > { %2504 = vperm.xlu0 %2903, %v2470_v4  }
 0x2ef   : > { %2509 = vperm.xlu1 %2904, %v2471_v5  }
 0x355   : > { %v1065_v55 = vpop.f32.mrf.mxu1 }
 0x356   : > { %v1118_v21 = vmul.f32 %v1065_v55, %v3646_v35 }
 0x357   : > { %v1067_v56 = vpop.f32.mrf.mxu1 }
 0x358   : > { %v3685_v48 = vadd.f32 %v1238_v6, %v1118_v21  ;;  %v1119_v57 = vmul.f32 %v1067_v56, %v3674_v43 }
 0x359   : > { %v1071_v7 = vpop.f32.mrf.mxu1 }
 0x35a   : > { %v1120_v39 = vmul.f32 %v1071_v7, %v3639_v32  ;;  %v3720_v6 = vadd.f32 %v1240_v9, %v1119_v57 }
 0x35b   : > { %v1073_v8 = vpop.f32.mrf.mxu1 }
 0x35c   : > { %v3676_v44 = vadd.f32 %v1244_v12, %v1120_v39  ;;  %v1121_v22 = vmul.f32 %v1073_v8, %v3665_v41 }
 0x35d   : > { %v1077_v10 = vpop.f32.mrf.mxu1 }
 0x35e   : > { %v1122_v31 = vmul.f32 %v1077_v10, %v3651_v36  ;;  %v1331_v62 = vmax.f32 %v3685_v48, %v3676_v44  ;;  %v3708_v1 = vadd.f32 %v1246_v15, %v1121_v22  ;;  %v3727_v10 = vld [vmem:[%s4133_s8 + $0x70] sm:$0xff] }
 0x35f   : > { %v1079_v11 = vpop.f32.mrf.mxu1 }
 0x360   : > { %v3687_v49 = vadd.f32 %v1250_v23, %v1122_v31  ;;  %v1123_v60 = vmul.f32 %v1079_v11, %v3681_v45 }
 0x361   : > { %v1083_v13 = vpop.f32.mrf.mxu1 }
 0x362   : > { %v1124_v46 = vmul.f32 %v1083_v13, %v3657_v40  ;;  %v1335_v5 = vmax.f32 %v1331_v62, %v3687_v49  ;;  %v3722_v7 = vadd.f32 %v1252_v28, %v1123_v60  ;;  %v1264_v13 = vpop.f32.mrf.mxu0  ;;  %v3744_v28 = vld [vmem:[%s4133_s8 + $0x68] sm:$0xff] }
 0x363   : > { %v1085_v14 = vpop.f32.mrf.mxu1 }
 0x364   : > { %v3703_v63 = vadd.f32 %v1256_v37, %v1124_v46  ;;  %v1125_v2 = vmul.f32 %v1085_v14, %v3692_v50  ;;  %v3733_v14 = vld [vmem:[%s4133_s8 + $0x58] sm:$0xff] }
 0x365   : > { %v1089_v18 = vpop.f32.mrf.mxu1  ;;  %v3759_v46 = vld [vmem:[%s4133_s8 + $0x78] sm:$0xff] }
 0x366   : > { %v1126_v51 = vmul.f32 %v1089_v18, %v908_v24  ;;  %v1339_v12 = vmax.f32 %v1335_v5, %v3703_v63  ;;  %v1332_v18 = vmax.f32 %v3720_v6, %v3708_v1  ;;  %v3754_v24 = vld [vmem:[%s4133_s8 + $0x80] sm:$0xff] }
 0x367   : > { %v1091_v20 = vpop.f32.mrf.mxu1 }
 0x368   : > { %v3717_v55 = vadd.f32 %v1262_v61, %v1126_v51  ;;  %v1127_v8 = vmul.f32 %v1091_v20, %v909_v0  ;;  %v3738_v20 = vadd.f32 %v1258_v25, %v1125_v2  ;;  %v1336_v21 = vmax.f32 %v1332_v18, %v3722_v7 }
 0x369   : > { %v1095_v26 = vpop.f32.mrf.mxu1 }
 0x36a   : > { %v1128_v56 = vmul.f32 %v1095_v26, %v3699_v52  ;;  %v1343_v26 = vmax.f32 %v1339_v12, %v3717_v55  ;;  %v1340_v51 = vmax.f32 %v1336_v21, %v3738_v20 }
 0x36b   : > { %v1097_v27 = vpop.f32.mrf.mxu1 }
 0x36c   : > { %v1129_v31 = vmul.f32 %v1097_v27, %v3733_v14 }
 0x36d   : > { %v1101_v29 = vpop.f32.mrf.mxu1 }
 0x36e   : > { %v1130_v9 = vmul.f32 %v1101_v29, %v3714_v3  ;;  %v3748_v29 = vadd.f32 %v1264_v13, %v1127_v8 }
 0x36f   : > { %v3641_v34 = vpop.f32.mrf.mxu1 }
 0x370   : > { %v1131_v57 = vmul.f32 %v3641_v34, %v3744_v28  ;;  %v1344_v0 = vmax.f32 %v1340_v51, %v3748_v29 }
 0x371   : > { %v1107_v38 = vpop.f32.mrf.mxu1 }
 0x372   : > { %v1132_v37 = vmul.f32 %v1107_v38, %v3727_v10 }
 0x373   : > { %v3659_v17 = vpop.f32.mrf.mxu1 }
 0x374   : > { %v1133_v2 = vmul.f32 %v3659_v17, %v3759_v46 }
 0x375   : > { %v1113_v42 = vpop.f32.mrf.mxu1 }
 0x376   : > { %v1134_v61 = vmul.f32 %v1113_v42, %v3754_v24 }
 0x377   : > { %v1115_v47 = vpop.f32.mrf.mxu1 }
 0x379   : > { %v1268_v53 = vpop.f32.mrf.mxu1 }
 0x37a   : > { %v1301_v15 = vadd.f32 %v1268_v53, %v1128_v56  ;;  %v3770_v53 = vld [vmem:[%s4133_s8 + $0x88] sm:$0xff] }
 0x37b   : > { %v1270_v4 = vpop.f32.mrf.mxu1 }
 0x37c   : > { %v1347_v22 = vmax.f32 %v1343_v26, %v1301_v15  ;;  %v1302_v27 = vadd.f32 %v1270_v4, %v1129_v31  ;;  %v1135_v4 = vmul.f32 %v1115_v47, %v3770_v53 }
 0x37d   : > { %v1274_v11 = vpop.f32.mrf.mxu1 }
 0x37e   : > { %v1303_v39 = vadd.f32 %v1274_v11, %v1130_v9  ;;  %v1348_v42 = vmax.f32 %v1344_v0, %v1302_v27 }
 0x37f   : > { %v1276_v23 = vpop.f32.mrf.mxu1 }
 0x380   : > { %v1351_v62 = vmax.f32 %v1347_v22, %v1303_v39  ;;  %v1304_v5 = vadd.f32 %v1276_v23, %v1131_v57 }
 0x381   : > { %v1280_v25 = vpop.f32.mrf.mxu1 }
 0x382   : > { %v3761_v38 = vadd.f32 %v1280_v25, %v1132_v37  ;;  %v1352_v9 = vmax.f32 %v1348_v42, %v1304_v5 }
 0x383   : > { %v1282_v60 = vpop.f32.mrf.mxu1 }
 0x384   : > { %v1355_v8 = vmax.f32 %v1351_v62, %v3761_v38  ;;  %v1306_v11 = vadd.f32 %v1282_v60, %v1133_v2 }
 0x385   : > { %v1286_v56 = vpop.f32.mrf.mxu1 }
 0x386   : > { %v3776_v34 = vadd.f32 %v1286_v56, %v1134_v61  ;;  %v1356_v23 = vmax.f32 %v1352_v9, %v1306_v11 }
 0x387   : > { %v1288_v12 = vpop.f32.mrf.mxu1 }
 0x388   : > { %v1359_v13 = vmax.f32 %v1355_v8, %v3776_v34  ;;  %v1308_v18 = vadd.f32 %v1288_v12, %v1135_v4 }
 0x38a   : > { %v1361_v26 = vsub.f32 %v3685_v48, %v1359_v13  ;;  %v1479_v37 = vsub.f32 %v3676_v44, %v1359_v13  ;;  %v1588_v17 = vsub.f32 %v3687_v49, %v1359_v13  ;;  %v1697_v21 = vsub.f32 %v3703_v63, %v1359_v13 }
 0x38b   : > { %v1806_v47 = vsub.f32 %v3717_v55, %v1359_v13  ;;  %v1360_v51 = vmax.f32 %v1356_v23, %v1308_v18  ;;  %v1899_v57 = vsub.f32 %v1301_v15, %v1359_v13  ;;  %v2008_v0 = vsub.f32 %v1303_v39, %v1359_v13 }
 0x38c   : > { %v1363_v31 = vmul.f32 1.442695, %v1361_v26  ;;  %v1481_v25 = vmul.f32 1.442695, %v1479_v37  ;;  %v1590_v22 = vmul.f32 1.442695, %v1588_v17  ;;  %v2226_v37 = vsub.f32 %v3776_v34, %v1359_v13 }
 0x38d   : > { %v1699_v60 = vmul.f32 1.442695, %v1697_v21  ;;  %v1362_v61 = vsub.f32 %v3720_v6, %v1360_v51  ;;  %v1480_v48 = vsub.f32 %v3708_v1, %v1360_v51  ;;  %v1808_v44 = vmul.f32 1.442695, %v1806_v47 }
 0x38e   : > { %2913 = vpow2.f32 %v1363_v31  ;;  %v1589_v49 = vsub.f32 %v3722_v7, %v1360_v51  ;;  %v1901_v62 = vmul.f32 1.442695, %v1899_v57  ;;  %v1698_v63 = vsub.f32 %v3738_v20, %v1360_v51 }
 0x38f   : > { %2915 = vpow2.f32 %v1481_v25  ;;  %v1365_v2 = vmul.f32 1.442695, %v1362_v61  ;;  %v1483_v55 = vmul.f32 1.442695, %v1480_v48  ;;  %v1900_v56 = vsub.f32 %v1302_v27, %v1360_v51  ;;  %v3803_v48 = vld [vmem:[%s4132_s7] sm:$0xff] }
 0x390   : > { %2917 = vpow2.f32 %v1590_v22  ;;  %v1592_v15 = vmul.f32 1.442695, %v1589_v49  ;;  %v1807_v8 = vsub.f32 %v3748_v29, %v1360_v51  ;;  %v1701_v6 = vmul.f32 1.442695, %v1698_v63 }
 0x391   : > { %2919 = vpow2.f32 %v1699_v60  ;;  %v2118_v4 = vsub.f32 %v1306_v11, %v1360_v51  ;;  %v2010_v1 = vmul.f32 1.442695, %v2008_v0  ;;  %v1903_v42 = vmul.f32 1.442695, %v1900_v56 }
 0x392   : > { %2921 = vpow2.f32 %v1808_v44  ;;  %v2117_v7 = vsub.f32 %v3761_v38, %v1359_v13  ;;  %v1810_v20 = vmul.f32 1.442695, %v1807_v8  ;;  %v2009_v39 = vsub.f32 %v1304_v5, %v1360_v51 }
 0x393   : > { %2923 = vpow2.f32 %v1901_v62  ;;  %v2121_v12 = vmul.f32 1.442695, %v2118_v4  ;;  %v2227_v23 = vsub.f32 %v1308_v18, %v1360_v51  ;;  %v2228_v5 = vmul.f32 1.442695, %v2226_v37  ;;  %v3823_v4 = vld [vmem:[%s4132_s7 + $0x8] sm:$0xff] }
 0x394   : > { %2925 = vpow2.f32 %v1365_v2  ;;  %v2119_v29 = vmul.f32 1.442695, %v2117_v7  ;;  %v2012_v17 = vmul.f32 1.442695, %v2009_v39 }
 0x395   : > { %2927 = vpow2.f32 %v1483_v55  ;;  %v2230_v22 = vmul.f32 1.442695, %v2227_v23 }
 0x396   : > { %2929 = vpow2.f32 %v1592_v15 }
 0x397   : > { %2931 = vpow2.f32 %v1701_v6 }
 0x398   : > { %2933 = vpow2.f32 %v2010_v1 }
 0x399   : > { %2935 = vpow2.f32 %v1903_v42 }
 0x39a   : > { %2937 = vpow2.f32 %v1810_v20 }
 0x39b   : > { %v2914_v9 = vpop.eup %2913  ;;  %2939 = vpow2.f32 %v2121_v12 }
 0x39c   : > { %v2916_v27 = vpop.eup %2915  ;;  %2941 = vpow2.f32 %v2119_v29  ;;  %v1371_v51 = vmul.f32 %v2914_v9, %v3646_v35 }
 0x39d   : > { %v1485_v26 = vadd.f32 %v2916_v27, %v2914_v9  ;;  %v3792_v11 = vpop.eup %2917  ;;  %2943 = vpow2.f32 %v2012_v17  ;;  %v1489_v2 = vmul.f32 %v2916_v27, %v3639_v32 }
 0x39e   : > { %v2920_v21 = vpop.eup %2919  ;;  %2945 = vpow2.f32 %v2228_v5  ;;  %v1598_v39 = vmul.f32 %v3792_v11, %v3651_v36 }
 0x39f   : > { %v1594_v38 = vadd.f32 %v3792_v11, %v1485_v26  ;;  %v3795_v25 = vpop.eup %2921  ;;  %2947 = vpow2.f32 %v2230_v22  ;;  %v1707_v55 = vmul.f32 %v2920_v21, %v3657_v40 }
 0x3a0   : > { %v2924_v47 = vpop.eup %2923 }
 0x3a1   : > { %v1703_v31 = vadd.f32 %v2920_v21, %v1594_v38  ;;  %v2926_v57 = vpop.eup %2925 }
 0x3a2   : > { %v2928_v13 = vpop.eup %2927  ;;  %v1372_v60 = vmul.f32 %v2926_v57, %v3674_v43 }
 0x3a3   : > { %v1812_v34 = vadd.f32 %v3795_v25, %v1703_v31  ;;  %v2930_v61 = vpop.eup %2929  ;;  %v1486_v18 = vadd.f32 %v2928_v13, %v2926_v57  ;;  %v1490_v49 = vmul.f32 %v2928_v13, %v3665_v41 }
 0x3a4   : > { %v2932_v44 = vpop.eup %2931  ;;  %1412 = vmatprep.subr.mxu0 %v1372_v60  ;;  %v1599_v56 = vmul.f32 %v2930_v61, %v3681_v45 }
 0x3a5   : > { %v3806_v62 = vpop.eup %2933  ;;  %v1905_v63 = vadd.f32 %v2924_v47, %v1812_v34  ;;  %v1595_v0 = vadd.f32 %v2930_v61, %v1486_v18  ;;  %v1708_v43 = vmul.f32 %v2932_v44, %v3692_v50  ;;  %1413 = vmatpush1.msra.mxu0 %v1371_v51  ;;  %v1909_v50 = vmul.f32 %v2924_v47, %v3699_v52 }
 0x3a6   : > { %v2936_v35 = vpop.eup %2935  ;;  %2830 = vmatmul.mubr.msk.f32.vlgmr.msra.gmra.mxu0 %vm1375_vm10, %v3803_v48  ;;  %1521 = vmatprep.subr.mxu0 %v1490_v49 }
 0x3a7   : > { %v2938_v15 = vpop.eup %2937  ;;  %v1704_v41 = vadd.f32 %v2932_v44, %v1595_v0  ;;  %1739 = vmatprep.subr.mxu1 %v1708_v43  ;;  %v1910_v8 = vmul.f32 %v2936_v35, %v3733_v14  ;;  %1522 = vmatpush1.msra.mxu0 %v1489_v2  ;;  %v2014_v32 = vadd.f32 %v3806_v62, %v1905_v63 }
 0x3a8   : > { %v2940_v6 = vpop.eup %2939  ;;  %1740 = vmatpush1.msra.mxu1 %v1707_v55  ;;  %1630 = vmatprep.subr.mxu0 %v1599_v56 }
 0x3a9   : > { %v1813_v40 = vadd.f32 %v2938_v15, %v1704_v41  ;;  %2836 = vmatmul.mubr.msk.f32.vlgmr.msra.gmra.mxu1 %vm1375_vm10, %v3803_v48  ;;  %1941 = vmatprep.subr.mxu1 %v1910_v8  ;;  %v2128_v45 = vmul.f32 %v2940_v6, %v3759_v46  ;;  %v2942_v14 = vpop.eup %2941 }
 0x3aa   : > { %1942 = vmatpush1.msra.mxu1 %v1909_v50  ;;  %1452 = vmatprep.mubr.f32.mxu0 %v2985_v33  ;;  %v2944_v1 = vpop.eup %2943  ;;  %v2123_v42 = vadd.f32 %v2942_v14, %v2014_v32  ;;  %v2127_v9 = vmul.f32 %v2942_v14, %v3727_v10  ;;  %v2018_v10 = vmul.f32 %v3806_v62, %v3714_v3 }
 0x3ab   : > { %v1906_v52 = vadd.f32 %v2936_v35, %v1813_v40  ;;  %2159 = vmatprep.subr.mxu1 %v2128_v45  ;;  %1779 = vmatprep.mubr.f32.mxu1 %v2985_v33  ;;  %v2946_v46 = vpop.eup %2945  ;;  %v2019_v36 = vmul.f32 %v2944_v1, %v3744_v28 }
 0x3ac   : > { %2831 = vmatmul.mubr.msk.f32.gmra.mxu0 %vm1375_vm10, %v3823_v4  ;;  %v2948_v12 = vpop.eup %2947  ;;  %v2232_v27 = vadd.f32 %v2946_v46, %v2123_v42  ;;  %v2236_v3 = vmul.f32 %v2946_v46, %v3754_v24  ;;  %v3889_v24 = vpop.permute.xlu0 %2422 }
 0x3ad   : > { %v2015_v7 = vadd.f32 %v2944_v1, %v1906_v52  ;;  %2837 = vmatmul.mubr.msk.f32.gmra.mxu1 %vm1375_vm10, %v3823_v4  ;;  %1555 = vmatprep.mubr.f32.mxu0 %v2985_v33  ;;  %v2237_v29 = vmul.f32 %v2948_v12, %v3770_v53  ;;  %v3891_v53 = vpop.permute.xlu1 %2427 }
 0x3ae   : > { %1975 = vmatprep.mubr.f32.mxu1 %v2985_v33 }
 0x3af   : > { %v2124_v20 = vadd.f32 %v2940_v6, %v2015_v7 }
 0x3b0   : > { %2832 = vmatmul.mubr.msk.f32.vlgmr.msra.gmra.mxu0 %vm1375_vm10, %v3803_v48  ;;  %v1460_v11 = vpop.permute.xlu0 %1459 }
 0x3b1   : > { %v2233_v26 = vadd.f32 %v2948_v12, %v2124_v20  ;;  %1631 = vmatpush1.msra.mxu0 %v1598_v39  ;;  %2840 = vmatmul.mubr.msk.f32.vlgmr.msra.gmra.mxu1 %vm1375_vm10, %v3803_v48  ;;  %v1462_v17 = vpop.permute.xlu1 %1461 }
 0x3b2   : > { %2160 = vmatpush1.msra.mxu1 %v2127_v9  ;;  %1844 = vmatprep.subr.mxu0 %v2938_v15 }
 0x3b3   : > { %2949 = vrcp.f32 %v2233_v26  ;;  %1561 = vmatprep.mubr.f32.mxu0 %v2985_v33  ;;  %1981 = vmatprep.mubr.f32.mxu1 %v2985_v33 }
 0x3b4   : > { %2833 = vmatmul.mubr.msk.f32.gmra.mxu0 %vm1375_vm10, %v3823_v4  ;;  %2951 = vrcp.f32 %v2232_v27  ;;  %v1569_v23 = vpop.permute.xlu0 %1568 }
 0x3b5   : > { %2841 = vmatmul.mubr.msk.f32.gmra.mxu1 %vm1375_vm10, %v3823_v4  ;;  %1664 = vmatprep.mubr.f32.mxu0 %v2985_v33  ;;  %v3893_v38 = vpop.permute.xlu1 %1570 }
 0x3b6   : > { %2193 = vmatprep.mubr.f32.mxu1 %v2985_v33 }
 0x3b8   : > { %2834 = vmatmul.mubr.msk.f32.vlgmr.msra.gmra.mxu0 %vm1375_vm10, %v3803_v48  ;;  %v1678_v21 = vpop.permute.xlu0 %1677 }
 0x3b9   : > { %1845 = vmatpush1.msra.mxu0 %v3795_v25  ;;  %2844 = vmatmul.mubr.msk.f32.vlgmr.msra.gmra.mxu1 %vm1375_vm10, %v3803_v48  ;;  %v3895_v31 = vpop.permute.xlu1 %1679 }
 0x3ba   : > { %2050 = vmatprep.subr.mxu0 %v2019_v36  ;;  %1670 = vmatprep.mubr.f32.mxu0 %v2985_v33 }
 0x3bb   : > { %2199 = vmatprep.mubr.f32.mxu1 %v2985_v33 }
 0x3bc   : > { %2835 = vmatmul.mubr.msk.f32.gmra.mxu0 %vm1375_vm10, %v3823_v4  ;;  %v3897_v5 = vpop.permute.xlu0 %1786 }
 0x3bd   : > { %2845 = vmatmul.mubr.msk.f32.gmra.mxu1 %vm1375_vm10, %v3823_v4  ;;  %1878 = vmatprep.mubr.f32.mxu0 %v2985_v33 }
 0x3be   : > { %2401 = vmatprep.mubr.f32.mxu1 %v2985_v33 }
 0x3c0   : > { %v2950_v28 = vpop.eup %2949  ;;  %2838 = vmatmul.mubr.msk.f32.vlgmr.msra.gmra.mxu0 %vm1375_vm10, %v3803_v48  ;;  %v3901_v25 = vpop.permute.xlu0 %1988 }
 0x3c1   : > { %2051 = vmatpush1.msra.mxu0 %v2018_v10  ;;  %2367 = vmatprep.subr.mxu1 %v2950_v28  ;;  %v2952_v37 = vpop.eup %2951 }
 0x3c2   : > { %2268 = vmatprep.subr.mxu0 %v2237_v29  ;;  %1884 = vmatprep.mubr.f32.mxu0 %v2985_v33 }
 0x3c3   : > { %2368 = vmatpush1.msra.mxu1 %v2952_v37 }
 0x3c4   : > { %2839 = vmatmul.mubr.msk.f32.gmra.mxu0 %vm1375_vm10, %v3823_v4  ;;  %2848 = vmatmul.mubr.msk.f32.vlgmr.msra.gmra.mxu1 %vm1375_vm10, %v3803_v48  ;;  %v3905_v47 = vpop.permute.xlu0 %2097 }
 0x3c5   : > { %2084 = vmatprep.mubr.f32.mxu0 %v2985_v33  ;;  %2407 = vmatprep.mubr.f32.mxu1 %v2985_v33 }
 0x3c8   : > { %2842 = vmatmul.mubr.msk.f32.vlgmr.msra.gmra.mxu0 %vm1375_vm10, %v3803_v48  ;;  %2849 = vmatmul.mubr.msk.f32.gmra.mxu1 %vm1375_vm10, %v3823_v4  ;;  %v3909_v34 = vpop.permute.xlu0 %2206 }
 0x3c9   : > { %2269 = vmatpush1.msra.mxu0 %v2236_v3  ;;  %2090 = vmatprep.mubr.f32.mxu0 %v2985_v33 }
 0x3cc   : > { %2843 = vmatmul.mubr.msk.f32.gmra.mxu0 %vm1375_vm10, %v3823_v4  ;;  %v3913_v60 = vpop.permute.xlu0 %2315 }
 0x3cd   : > { %2302 = vmatprep.mubr.f32.mxu0 %v2985_v33 }
 0x3d0   : > { %2846 = vmatmul.mubr.msk.f32.vlgmr.msra.gmra.mxu0 %vm1375_vm10, %v3803_v48  ;;  %v1464_v18 = vpop.permute.xlu0 %1463 }
 0x3d1   : > { %2308 = vmatprep.mubr.f32.mxu0 %v2985_v33  ;;  %v3899_v33 = vpop.permute.xlu1 %1788  ;;  %v1469_v20 = vsel %vm732_vm8, %v1464_v18, %v1460_v11  ;;  %v1467_v36 = vsel %vm732_vm8, %v1460_v11, %v1464_v18 }
 0x3d4   : > { %2847 = vmatmul.mubr.msk.f32.gmra.mxu0 %vm1375_vm10, %v3823_v4  ;;  %v1573_v49 = vpop.permute.xlu0 %1572 }
 0x3d5   : > { %2576 = vmatprep.mubr.bf16.mxu0 %v2977_v16  ;;  %v3903_v22 = vpop.permute.xlu1 %1990  ;;  %v1578_v1 = vsel %vm753_vm7, %v1573_v49, %v1569_v23  ;;  %v1576_v39 = vsel %vm753_vm7, %v1569_v23, %v1573_v49 }
 0x3d8   : > { %v1682_v55 = vpop.permute.xlu0 %1681 }
 0x3d9   : > { %v3907_v57 = vpop.permute.xlu1 %2099  ;;  %v1687_v9 = vsel %vm774_vm6, %v1682_v55, %v1678_v21  ;;  %v1685_v23 = vsel %vm774_vm6, %v1678_v21, %v1682_v55 }
 0x3dc   : > { %v1791_v40 = vpop.permute.xlu0 %1790 }
 0x3dd   : > { %v3911_v13 = vpop.permute.xlu1 %2208 }
 0x3e0   : > { %v1993_v7 = vpop.permute.xlu0 %1992 }
 0x3e1   : > { %v3915_v61 = vpop.permute.xlu1 %2317 }
 0x3e5   : > { %v1466_v48 = vpop.permute.xlu1 %1465 }
 0x3e6   : > { %v1470_v29 = vsel %vm732_vm8, %v1466_v48, %v1462_v17  ;;  %v1468_v37 = vsel %vm732_vm8, %v1462_v17, %v1466_v48 }
 0x3e9   : > { %v1575_v43 = vpop.permute.xlu1 %1574 }
 0x3ea   : > { %v1579_v3 = vsel %vm753_vm7, %v1575_v43, %v3893_v38  ;;  %v1577_v17 = vsel %vm753_vm7, %v3893_v38, %v1575_v43 }
 0x3ed   : > { %v1684_v6 = vpop.permute.xlu1 %1683 }
 0x3ee   : > { %v1688_v21 = vsel %vm774_vm6, %v1684_v6, %v3895_v31  ;;  %v1686_v38 = vsel %vm774_vm6, %v3895_v31, %v1684_v6 }
 0x3f1   : > { %v1793_v52 = vpop.permute.xlu1 %1792 }
 0x3f2   : > { %v1795_v6 = vsel %vm795_vm5, %v3899_v33, %v1793_v52 }
 0x466   : > { %v1448_v51 = vpop.f32.mrf.mxu0 }
 0x467   : > { %v1471_v26 = vmul.f32 %v1469_v20, %v1448_v51  ;;  %v3948_v51 = vpop.permute.xlu1 %1994 }
 0x468   : > { %v1450_v44 = vpop.f32.mrf.mxu0 }
 0x469   : > { %v1775_v62 = vpop.f32.mrf.mxu1 }
 0x46b   : > { %v1777_v63 = vpop.f32.mrf.mxu1 }
 0x46c   : > { %v1454_v0 = vpop.f32.mrf.mxu0 }
 0x46d   : > { %v3917_v2 = vpop.f32.mrf.mxu1 }
 0x46e   : > { %v1456_v35 = vpop.f32.mrf.mxu0 }
 0x46f   : > { %v3919_v56 = vpop.f32.mrf.mxu1 }
 0x470   : > { %v1557_v15 = vpop.f32.mrf.mxu0 }
 0x471   : > { %v3921_v41 = vpop.f32.mrf.mxu1  ;;  %v1580_v46 = vmul.f32 %v1578_v1, %v1557_v15  ;;  %v1472_v15 = vmul.f32 %v1467_v36, %v1450_v44  ;;  %v1473_v1 = vmul.f32 %v1470_v29, %v1454_v0  ;;  %v2102_v44 = vpop.permute.xlu0 %2101  ;;  %v1794_v0 = vsel %vm795_vm5, %v3897_v5, %v1791_v40 }
 0x472   : > { %v1559_v8 = vpop.f32.mrf.mxu0 }
 0x473   : > { %v3923_v50 = vpop.f32.mrf.mxu1  ;;  %v1581_v10 = vmul.f32 %v1576_v39, %v1559_v8  ;;  %v1584_v11 = vadd.f32 %v1580_v46, %v1471_v26 }
 0x474   : > { %v1563_v32 = vpop.f32.mrf.mxu0 }
 0x475   : > { %v3925_v4 = vpop.f32.mrf.mxu1  ;;  %v1582_v18 = vmul.f32 %v1579_v3, %v1563_v32  ;;  %v1585_v46 = vadd.f32 %v1581_v10, %v1472_v15  ;;  %v1799_v10 = vmul.f32 %v1794_v0, %v1777_v63 }
 0x476   : > { %v1565_v45 = vpop.f32.mrf.mxu0 }
 0x477   : > { %v3933_v12 = vpop.f32.mrf.mxu1  ;;  %v1583_v32 = vmul.f32 %v1577_v17, %v1565_v45  ;;  %v1586_v26 = vadd.f32 %v1582_v18, %v1473_v1 }
 0x478   : > { %v1666_v14 = vpop.f32.mrf.mxu0 }
 0x479   : > { %v1689_v28 = vmul.f32 %v1687_v9, %v1666_v14  ;;  %v1796_v14 = vsel %vm795_vm5, %v1791_v40, %v3897_v5  ;;  %v3956_v48 = vpop.f32.mrf.mxu1  ;;  %v1474_v9 = vmul.f32 %v1468_v37, %v1456_v35 }
 0x47a   : > { %v1668_v42 = vpop.f32.mrf.mxu0  ;;  %v1798_v39 = vmul.f32 %v1796_v14, %v1775_v62  ;;  %v1797_v62 = vsel %vm795_vm5, %v1793_v52, %v3899_v33  ;;  %v2105_v14 = vsel %vm845_vm3, %v3905_v47, %v2102_v44 }
 0x47b   : > { %v1690_v8 = vmul.f32 %v1685_v23, %v1668_v42  ;;  %v1693_v42 = vadd.f32 %v1689_v28, %v1584_v11  ;;  %v2197_v45 = vpop.f32.mrf.mxu1  ;;  %v2104_v28 = vpop.permute.xlu1 %2103  ;;  %v1587_v5 = vadd.f32 %v1583_v32, %v1474_v9  ;;  %v1800_v31 = vmul.f32 %v1797_v62, %v3917_v2 }
 0x47c   : > { %v1672_v27 = vpop.f32.mrf.mxu0  ;;  %v2211_v23 = vpop.permute.xlu0 %2210  ;;  %v1998_v2 = vsel %vm824_vm4, %v1993_v7, %v3901_v25  ;;  %v2106_v9 = vsel %vm845_vm3, %v3907_v57, %v2104_v28 }
 0x47d   : > { %v1691_v20 = vmul.f32 %v1688_v21, %v1672_v27  ;;  %v1694_v36 = vadd.f32 %v1690_v8, %v1585_v46  ;;  %v1802_v40 = vadd.f32 %v1798_v39, %v1693_v42  ;;  %v1801_v8 = vmul.f32 %v1795_v6, %v3919_v56  ;;  %v2201_v33 = vpop.f32.mrf.mxu1 }
 0x47e   : > { %v1674_v49 = vpop.f32.mrf.mxu0  ;;  %v1997_v56 = vsel %vm824_vm4, %v3903_v22, %v3948_v51 }
 0x47f   : > { %v1692_v29 = vmul.f32 %v1686_v38, %v1674_v49  ;;  %v1695_v35 = vadd.f32 %v1691_v20, %v1586_v26  ;;  %v1803_v11 = vadd.f32 %v1799_v10, %v1694_v36  ;;  %v2203_v39 = vpop.f32.mrf.mxu1 }
 0x480   : > { %v1880_v55 = vpop.f32.mrf.mxu0  ;;  %v2320_v38 = vpop.permute.xlu0 %2319 }
 0x481   : > { %v1891_v3 = vmul.f32 %v1880_v55, %v3471_v19  ;;  %v1996_v19 = vsel %vm824_vm4, %v3901_v25, %v1993_v7  ;;  %v1696_v49 = vadd.f32 %v1692_v29, %v1587_v5  ;;  %v1804_v17 = vadd.f32 %v1800_v31, %v1695_v35  ;;  %v2213_v7 = vpop.permute.xlu1 %2212 }
 0x482   : > { %v1882_v43 = vpop.f32.mrf.mxu0  ;;  %v2107_v25 = vsel %vm845_vm3, %v2102_v44, %v3905_v47  ;;  %v2108_v29 = vsel %vm845_vm3, %v2104_v28, %v3907_v57  ;;  %v2215_v35 = vsel %vm866_vm2, %v3911_v13, %v2213_v7 }
 0x483   : > { %v1892_v37 = vmul.f32 %v1882_v43, %v3556_v58  ;;  %v1895_v15 = vadd.f32 %v1891_v3, %v1802_v40  ;;  %v2000_v58 = vmul.f32 %v1996_v19, %v3921_v41  ;;  %v1805_v32 = vadd.f32 %v1801_v8, %v1696_v49 }
 0x484   : > { %v1886_v27 = vpop.f32.mrf.mxu0  ;;  %v2403_v3 = vpop.f32.mrf.mxu1  ;;  %v2220_v19 = vmul.f32 %v2215_v35, %v2201_v33 }
 0x485   : > { %v1893_v18 = vmul.f32 %v1886_v27, %v3476_v30  ;;  %v1896_v1 = vadd.f32 %v1892_v37, %v1803_v11  ;;  %v2001_v30 = vmul.f32 %v1998_v2, %v3923_v50  ;;  %v2004_v42 = vadd.f32 %v2000_v58, %v1895_v15  ;;  %v2322_v37 = vpop.permute.xlu1 %2321 }
 0x486   : > { %v1888_v63 = vpop.f32.mrf.mxu0  ;;  %v1999_v50 = vsel %vm824_vm4, %v3948_v51, %v3903_v22  ;;  %v2216_v22 = vsel %vm866_vm2, %v2211_v23, %v3909_v34  ;;  %v2324_v58 = vsel %vm887_vm9, %v3915_v61, %v2322_v37 }
 0x487   : > { %v1894_v21 = vmul.f32 %v1888_v63, %v3560_v59  ;;  %v1897_v46 = vadd.f32 %v1893_v18, %v1804_v17  ;;  %v2002_v59 = vmul.f32 %v1997_v56, %v3925_v4  ;;  %v2005_v43 = vadd.f32 %v2001_v30, %v1896_v1  ;;  %v2405_v63 = vpop.f32.mrf.mxu1 }
 0x488   : > { %v2086_v52 = vpop.f32.mrf.mxu0  ;;  %v2003_v36 = vmul.f32 %v1999_v50, %v3933_v12  ;;  %v2214_v4 = vsel %vm866_vm2, %v3909_v34, %v2211_v23  ;;  %v2219_v12 = vmul.f32 %v2216_v22, %v2197_v45  ;;  %v2323_v34 = vsel %vm887_vm9, %v3913_v60, %v2320_v38  ;;  %v2912_v22 = vld [vmem:[%s4136_s11 + $0x18] sm:$0xff]  }
 0x489   : > { %v2109_v55 = vmul.f32 %v2105_v14, %v2086_v52  ;;  %v1898_v47 = vadd.f32 %v1894_v21, %v1805_v32  ;;  %v2218_v10 = vmul.f32 %v2214_v4, %v3956_v48  ;;  %v2006_v27 = vadd.f32 %v2002_v59, %v1897_v46  ;;  %v2409_v21 = vpop.f32.mrf.mxu1  ;;  %v2439_v59 = vpop.permute.xlu0 %2438  ;;  %v2911_v4 = vld [vmem:[%s4136_s11 + $0x10] sm:$0xff]  }
 0x48a   : > { %v2088_v41 = vpop.f32.mrf.mxu0  ;;  %v2325_v45 = vsel %vm887_vm9, %v2320_v38, %v3913_v60  ;;  %v2217_v18 = vsel %vm866_vm2, %v2213_v7, %v3911_v13  ;;  %v2326_v17 = vsel %vm887_vm9, %v2322_v37, %v3915_v61  ;;  %v2444_v50 = vpop.permute.xlu1 %2443 }
 0x48b   : > { %v2110_v20 = vmul.f32 %v2107_v25, %v2088_v41  ;;  %v2113_v44 = vadd.f32 %v2109_v55, %v2004_v42  ;;  %v2007_v6 = vadd.f32 %v2003_v36, %v1898_v47  ;;  %v2221_v2 = vmul.f32 %v2217_v18, %v2203_v39  ;;  %v2411_v32 = vpop.f32.mrf.mxu1 }
 0x48c   : > { %v2092_v0 = vpop.f32.mrf.mxu0 }
 0x48d   : > { %v2111_v26 = vmul.f32 %v2106_v9, %v2092_v0  ;;  %v2114_v62 = vadd.f32 %v2110_v20, %v2005_v43  ;;  %v2222_v28 = vadd.f32 %v2218_v10, %v2113_v44 }
 0x48e   : > { %v2094_v51 = vpop.f32.mrf.mxu0  ;;  %v2480_v35 = vpop.permute.xlu1 %2479 }
 0x48f   : > { %v2112_v5 = vmul.f32 %v2108_v29, %v2094_v51  ;;  %v2115_v31 = vadd.f32 %v2111_v26, %v2006_v27  ;;  %v2223_v11 = vadd.f32 %v2219_v12, %v2114_v62  ;;  %v2475_v51 = vpop.permute.xlu0 %2474  ;;  %v2618_v27 = vld [vmem:[%s3130_s25 + $0x8] sm:$0xff] }
 0x490   : > { %v2304_v40 = vpop.f32.mrf.mxu0 }
 0x491   : > { %v2327_v57 = vmul.f32 %v2323_v34, %v2304_v40  ;;  %v2116_v23 = vadd.f32 %v2112_v5, %v2007_v6  ;;  %v2224_v14 = vadd.f32 %v2220_v19, %v2115_v31 }
 0x492   : > { %v2306_v48 = vpop.f32.mrf.mxu0 }
 0x493   : > { %v2328_v49 = vmul.f32 %v2325_v45, %v2306_v48  ;;  %v2331_v15 = vadd.f32 %v2327_v57, %v2222_v28  ;;  %v2225_v13 = vadd.f32 %v2221_v2, %v2116_v23  ;;  %v2620_v57 = vld [vmem:[%s3130_s25 + $0x18] sm:$0xff]  ;;  %v2485_v45 = vpop.permute.xlu0 %2484  ;;  %v2621_v23 = vld [vmem:[%s3130_s25 + $0x20] sm:$0xff] }
 0x494   : > { %v2310_v8 = vpop.f32.mrf.mxu0 }
 0x495   : > { %v2329_v33 = vmul.f32 %v2324_v58, %v2310_v8  ;;  %v2332_v52 = vadd.f32 %v2328_v49, %v2223_v11  ;;  %v2414_v1 = vmul.f32 %v2403_v3, %v2331_v15  ;;  %v2617_v3 = vld [vmem:[%s3130_s25] sm:$0xff]  ;;  %v2622_v8 = vld [vmem:[%s3130_s25 + $0x28] sm:$0xff] }
 0x496   : > { %v2312_v60 = vpop.f32.mrf.mxu0 }
 0x497   : > { %v2330_v55 = vmul.f32 %v2326_v17, %v2312_v60  ;;  %v2415_v30 = vmul.f32 %v2405_v63, %v2332_v52  ;;  %v2333_v56 = vadd.f32 %v2329_v33, %v2224_v14  ;;  %v2430_v46 = vmul.f32 %v3889_v24, %v2414_v1  ;;  %v2490_v52 = vpop.permute.xlu1 %2489  ;;  %v2623_v1 = vld [vmem:[%s3130_s25 + $0x30] sm:$0xff] }
 0x499   : > { %v2431_v41 = vmul.f32 %v3889_v24, %v2415_v30  ;;  %v2416_v25 = vmul.f32 %v2409_v21, %v2333_v56  ;;  %v2334_v7 = vadd.f32 %v2330_v55, %v2225_v13  ;;  %v2446_v0 = vadd.f32 %v2439_v59, %v2430_v46  ;;  %v2909_v24 = vld [vmem:[%s4136_s11] sm:$0xff]   ;;  %v2624_v30 = vld [vmem:[%s3130_s25 + $0x38] sm:$0xff] }
 0x49a   : > { %v2625_v46 = vld [vmem:[%s3130_s25 + $0x40] sm:$0xff] }
 0x49b   : > { %v2432_v42 = vmul.f32 %v3891_v53, %v2416_v25  ;;  %v2417_v20 = vmul.f32 %v2411_v32, %v2334_v7  ;;  %v2447_v39 = vadd.f32 %v2439_v59, %v2431_v41  ;;  %v2450_v43 = vmax.f32 %v2446_v0, 0.0  ;;  %v2495_v25 = vpop.permute.xlu0 %2494  ;;  %v2500_v0 = vpop.permute.xlu1 %2499 }
 0x49d   : > { %v2448_v54 = vadd.f32 %v2444_v50, %v2432_v42  ;;  %v2433_v61 = vmul.f32 %v3891_v53, %v2417_v20  ;;  %v2451_v47 = vmax.f32 %v2447_v39, 0.0  ;;  %v2910_v53 = vld [vmem:[%s4136_s11 + $0x8] sm:$0xff]  }
 0x49f   : > { %v2449_v9 = vadd.f32 %v2444_v50, %v2433_v61  ;;  %v2452_v38 = vmax.f32 %v2448_v54, 0.0  ;;  %v2626_v50 = vld [vmem:[%s3130_s25 + $0x48] sm:$0xff] }
 0x4a1   : > { %v2453_v44 = vmax.f32 %v2449_v9, 0.0  ;;  %v2462_v36 = vpack.c.bf16 %v2452_v38, %v2450_v43  ;;  %v2627_v38 = vld [vmem:[%s3130_s25 + $0x50] sm:$0xff] }
 0x4a3   : > { %v2463_v26 = vpack.c.bf16 %v2453_v44, %v2451_v47 }
 0x4a5   : > { %2558 = vmatprep.subr.bf16.mxu0 %v2463_v26 }
 0x4a6   : > { %2559 = vmatpush1.bf16.msra.mxu0 %v2462_v36  ;;  %v2628_v36 = vld [vmem:[%s3130_s25 + $0x58] sm:$0xff] }
 0x4a9   : > { %2854 = vmatmul.mubr.msk.bf16.vlgmr.msra.gmra.mxu0 %vm641_vm1, %v2909_v24 }
 0x4aa   : > { %2586 = vmatprep.mubr.bf16.mxu0 %v2977_v16 }
 0x4b1   : > { %2855 = vmatmul.mubr.msk.bf16.gmra.mxu0 %vm641_vm1, %v2910_v53 }
 0x4b2   : > { %2596 = vmatprep.mubr.bf16.mxu0 %v2977_v16 }
 0x4b9   : > { %2856 = vmatmul.mubr.msk.bf16.gmra.mxu0 %vm641_vm1, %v2911_v4 }
 0x4ba   : > { %2606 = vmatprep.mubr.bf16.mxu0 %v2977_v16  ;;  %v2619_v16 = vld [vmem:[%s3130_s25 + $0x10] sm:$0xff] }
 0x4c1   : > { %2857 = vmatmul.mubr.msk.bf16.gmra.mxu0 %vm641_vm1, %v2912_v22  ;;  %v2505_v22 = vpop.permute.xlu0 %2504 }
 0x569   : > { %v2578_v29 = vpop.f32.mrf.mxu0 }
 0x56a   : > { %v2579_v10 = vadd.f32 %v2578_v29, %v2475_v51  ;;  %v2629_v29 = vld [vmem:[%s3130_s25 + $0x60] sm:$0xff] }
 0x56b   : > { %v2580_v62 = vpop.f32.mrf.mxu0 }
 0x56c   : > { %v2633_v5 = vadd.f32 %v2617_v3, %v2579_v10  ;;  %v2581_v12 = vadd.f32 %v2580_v62, %v2475_v51 }
 0x56d   : > { %v2582_v40 = vpop.f32.mrf.mxu0 }
 0x56e   : > { %v2649_v34 = vmax.f32 %v2633_v5, 0.0  ;;  %v2634_v37 = vadd.f32 %v2618_v27, %v2581_v12  ;;  %v2583_v31 = vadd.f32 %v2582_v40, %v2480_v35  ;;  %v2630_v5 = vld [vmem:[%s3130_s25 + $0x68] sm:$0xff] }
 0x56f   : > { %v2584_v6 = vpop.f32.mrf.mxu0 }
 0x570   : > { %2665 = vst [vmem:[%s4062_s18] sm:$0xff] %v2649_v34  ;;  %v2650_v28 = vmax.f32 %v2634_v37, 0.0  ;;  %v2635_v19 = vadd.f32 %v2619_v16, %v2583_v31  ;;  %v2585_v48 = vadd.f32 %v2584_v6, %v2480_v35  ;;  %v2510_v16 = vpop.permute.xlu1 %2509  ;;  %v2631_v37 = vld [vmem:[%s3130_s25 + $0x70] sm:$0xff] }
 0x571   : > { %v2588_v63 = vpop.f32.mrf.mxu0 }
 0x572   : > { %2666 = vst [vmem:[%s4062_s18 + $0x8] sm:$0xff] %v2650_v28  ;;  %v2651_v49 = vmax.f32 %v2635_v19, 0.0  ;;  %v2636_v15 = vadd.f32 %v2620_v57, %v2585_v48  ;;  %v2589_v11 = vadd.f32 %v2588_v63, %v2485_v45  ;;  %v2632_v19 = vld [vmem:[%s3130_s25 + $0x78] sm:$0xff]  ;;  %s2864_s25 = sshll.u32 (%p3087_p5), %s4169_s30, 4 }
 0x573   : > { %v2590_v18 = vpop.f32.mrf.mxu0  ;;  %s2690_s16 = scalar_lea.vmem (%p3087_p5), %s4138_s13, %s2864_s25 }
 0x574   : > { %2667 = vst [vmem:[%s4062_s18 + $0x10] sm:$0xff] %v2651_v49  ;;  %v2652_v58 = vmax.f32 %v2636_v15, 0.0  ;;  %v2637_v2 = vadd.f32 %v2621_v23, %v2589_v11  ;;  %v2591_v33 = vadd.f32 %v2590_v18, %v2485_v45 }
 0x575   : > { %v2592_v14 = vpop.f32.mrf.mxu0 }
 0x576   : > { %2668 = vst [vmem:[%s4062_s18 + $0x18] sm:$0xff] %v2652_v58  ;;  %v2653_v60 = vmax.f32 %v2637_v2, 0.0  ;;  %v2638_v17 = vadd.f32 %v2622_v8, %v2591_v33  ;;  %v2593_v21 = vadd.f32 %v2592_v14, %v2490_v52 }
 0x577   : > { %v2594_v55 = vpop.f32.mrf.mxu0  ;;  %v2703_v11 = vld [vmem:[%s4062_s18] sm:$0xff] (%p3087_p5) }
 0x578   : > { %2669 = vst [vmem:[%s4062_s18 + $0x20] sm:$0xff] %v2653_v60  ;;  %v2654_v56 = vmax.f32 %v2638_v17, 0.0  ;;  %v2639_v13 = vadd.f32 %v2623_v1, %v2593_v21  ;;  %v2595_v41 = vadd.f32 %v2594_v55, %v2490_v52  ;;  %2704 = vst [vmem:[%s2690_s16] sm:$0xff] (%p3087_p5), %v2703_v11 }
 0x579   : > { %v2598_v7 = vpop.f32.mrf.mxu0  ;;  %v2705_v18 = vld [vmem:[%s4062_s18 + $0x8] sm:$0xff] (%p3087_p5) }
 0x57a   : > { %2670 = vst [vmem:[%s4062_s18 + $0x28] sm:$0xff] %v2654_v56  ;;  %v2655_v32 = vmax.f32 %v2639_v13, 0.0  ;;  %v2640_v42 = vadd.f32 %v2624_v30, %v2595_v41  ;;  %v2599_v20 = vadd.f32 %v2598_v7, %v2495_v25  ;;  %2706 = vst [vmem:[%s2690_s16 + $0x8] sm:$0xff] (%p3087_p5), %v2705_v18 }
 0x57b   : > { %v2600_v59 = vpop.f32.mrf.mxu0  ;;  %v2707_v8 = vld [vmem:[%s4062_s18 + $0x10] sm:$0xff] (%p3087_p5) }
 0x57c   : > { %2671 = vst [vmem:[%s4062_s18 + $0x30] sm:$0xff] %v2655_v32  ;;  %v2656_v39 = vmax.f32 %v2640_v42, 0.0  ;;  %v2641_v54 = vadd.f32 %v2625_v46, %v2599_v20  ;;  %v2601_v61 = vadd.f32 %v2600_v59, %v2495_v25  ;;  %2708 = vst [vmem:[%s2690_s16 + $0x20] sm:$0xff] (%p3087_p5), %v2707_v8 }
 0x57d   : > { %v2602_v9 = vpop.f32.mrf.mxu0  ;;  %v2709_v58 = vld [vmem:[%s4062_s18 + $0x18] sm:$0xff] (%p3087_p5) }
 0x57e   : > { %2672 = vst [vmem:[%s4062_s18 + $0x38] sm:$0xff] %v2656_v39  ;;  %v2657_v47 = vmax.f32 %v2641_v54, 0.0  ;;  %v2642_v44 = vadd.f32 %v2626_v50, %v2601_v61  ;;  %v2603_v43 = vadd.f32 %v2602_v9, %v2500_v0  ;;  %2710 = vst [vmem:[%s2690_s16 + $0x28] sm:$0xff] (%p3087_p5), %v2709_v58 }
 0x57f   : > { %v2604_v26 = vpop.f32.mrf.mxu0  ;;  %v2711_v2 = vld [vmem:[%s4062_s18 + $0x20] sm:$0xff] (%p3087_p5) }
 0x580   : > { %2673 = vst [vmem:[%s4062_s18 + $0x40] sm:$0xff] %v2657_v47  ;;  %v2658_v24 = vmax.f32 %v2642_v44, 0.0  ;;  %v2643_v53 = vadd.f32 %v2627_v38, %v2603_v43  ;;  %v2605_v4 = vadd.f32 %v2604_v26, %v2500_v0  ;;  %2712 = vst [vmem:[%s2690_s16 + $0x40] sm:$0xff] (%p3087_p5), %v2711_v2 }
 0x581   : > { %v2608_v51 = vpop.f32.mrf.mxu0  ;;  %v2713_v33 = vld [vmem:[%s4062_s18 + $0x28] sm:$0xff] (%p3087_p5) }
 0x582   : > { %2674 = vst [vmem:[%s4062_s18 + $0x48] sm:$0xff] %v2658_v24  ;;  %v2659_v3 = vmax.f32 %v2643_v53, 0.0  ;;  %v2644_v10 = vadd.f32 %v2628_v36, %v2605_v4  ;;  %v2609_v62 = vadd.f32 %v2608_v51, %v2505_v22  ;;  %2714 = vst [vmem:[%s2690_s16 + $0x48] sm:$0xff] (%p3087_p5), %v2713_v33 }
 0x583   : > { %v2610_v27 = vpop.f32.mrf.mxu0  ;;  %v2715_v52 = vld [vmem:[%s4062_s18 + $0x30] sm:$0xff] (%p3087_p5) }
 0x584   : > { %2675 = vst [vmem:[%s4062_s18 + $0x50] sm:$0xff] %v2659_v3  ;;  %v2660_v12 = vmax.f32 %v2644_v10, 0.0  ;;  %v2645_v35 = vadd.f32 %v2629_v29, %v2609_v62  ;;  %v2611_v40 = vadd.f32 %v2610_v27, %v2505_v22  ;;  %2716 = vst [vmem:[%s2690_s16 + $0x60] sm:$0xff] (%p3087_p5), %v2715_v52 }
 0x585   : > { %v2612_v34 = vpop.f32.mrf.mxu0  ;;  %v2717_v14 = vld [vmem:[%s4062_s18 + $0x38] sm:$0xff] (%p3087_p5) }
 0x586   : > { %2676 = vst [vmem:[%s4062_s18 + $0x58] sm:$0xff] %v2660_v12  ;;  %v2661_v31 = vmax.f32 %v2645_v35, 0.0  ;;  %v2646_v6 = vadd.f32 %v2630_v5, %v2611_v40  ;;  %v2613_v57 = vadd.f32 %v2612_v34, %v2510_v16  ;;  %2718 = vst [vmem:[%s2690_s16 + $0x68] sm:$0xff] (%p3087_p5), %v2717_v14 }
 0x587   : > { %v2614_v28 = vpop.f32.mrf.mxu0  ;;  %v2719_v1 = vld [vmem:[%s4062_s18 + $0x40] sm:$0xff] (%p3087_p5) }
 0x588   : > { %2677 = vst [vmem:[%s4062_s18 + $0x60] sm:$0xff] %v2661_v31  ;;  %v2662_v48 = vmax.f32 %v2646_v6, 0.0  ;;  %v2647_v45 = vadd.f32 %v2631_v37, %v2613_v57  ;;  %v2615_v63 = vadd.f32 %v2614_v28, %v2510_v16  ;;  %2720 = vst [vmem:[%s2690_s16 + $0x80] sm:$0xff] (%p3087_p5), %v2719_v1 }
 0x589   : > { %v2721_v60 = vld [vmem:[%s4062_s18 + $0x48] sm:$0xff] (%p3087_p5) }
 0x58a   : > { %2678 = vst [vmem:[%s4062_s18 + $0x68] sm:$0xff] %v2662_v48  ;;  %v2663_v23 = vmax.f32 %v2647_v45, 0.0  ;;  %v2648_v49 = vadd.f32 %v2632_v19, %v2615_v63  ;;  %2687 = sbr.rel (!%p3087_p5) target bundleno = 1431 (0x597), region = 99  ;;  %2722 = vst [vmem:[%s2690_s16 + $0x88] sm:$0xff] (%p3087_p5), %v2721_v60 }
 0x58b   : > { %v2723_v17 = vld [vmem:[%s4062_s18 + $0x50] sm:$0xff] (%p3087_p5) }
 0x58c   : > { %2679 = vst [vmem:[%s4062_s18 + $0x70] sm:$0xff] %v2663_v23  ;;  %v2664_v15 = vmax.f32 %v2648_v49, 0.0  ;;  %2724 = vst [vmem:[%s2690_s16 + $0xa0] sm:$0xff] (%p3087_p5), %v2723_v17 }
 0x58d   : > { %v2725_v21 = vld [vmem:[%s4062_s18 + $0x58] sm:$0xff] (%p3087_p5) }
 0x58e   : > { %2680 = vst [vmem:[%s4062_s18 + $0x78] sm:$0xff] %v2664_v15  ;;  %2726 = vst [vmem:[%s2690_s16 + $0xa8] sm:$0xff] (%p3087_p5), %v2725_v21 }
 0x58f   : > { %v2727_v55 = vld [vmem:[%s4062_s18 + $0x60] sm:$0xff] }
 0x590   : > { %2728 = vst [vmem:[%s2690_s16 + $0xc0] sm:$0xff] %v2727_v55 }
 0x591   : > { %v2729_v30 = vld [vmem:[%s4062_s18 + $0x68] sm:$0xff] }
 0x592   : > { %2730 = vst [vmem:[%s2690_s16 + $0xc8] sm:$0xff] %v2729_v30 }
 0x593   : > { %v2731_v56 = vld [vmem:[%s4062_s18 + $0x70] sm:$0xff] }
 0x594   : > { %2732 = vst [vmem:[%s2690_s16 + $0xe0] sm:$0xff] %v2731_v56 }
 0x595   : > { %v2733_v13 = vld [vmem:[%s4062_s18 + $0x78] sm:$0xff] }
 0x596   : > { %2734 = vst [vmem:[%s2690_s16 + $0xe8] sm:$0xff] %v2733_v13 }
 0x597 PF: > { %p20_p10 = scmp.ge.s32.totalorder %s3074_s29, 4   ;;  %s4170_s25 = smov %s2971_s26 }
 0x598   : > { %s4171_s26 = smov %s3085_s15  ;;  %s4172_s27 = smov %s3074_s29 }
 0x599   :  { %22 = sbr.rel (!%p20_p10) target bundleno = 5 (0x5), region = 153 }

</bundles_post_ra>
